<compile_context>
chip_gen: v6e
topology: v6e:2x2x1
jax: 0.10.0
libtpu: 0.0.40
codegen_flags: <defaults>
</compile_context>

<pallas_src>
import jax
import jax.numpy as jnp
import numpy as np
from jax.experimental import pallas as pl
from jax.experimental.pallas import tpu as pltpu

CIN = 100
COUT = 100
KH, KW = 4, 4
SH, SW = 2, 1
PH, PW = 1, 1
C_PAD = 128            # channels padded to the 128-lane width
K_PACK = 2 * C_PAD     # two kh taps packed along the MXU contraction axis
MAX_HBLK = 32          # output-row pairs per grid step (keeps VMEM blocks ~1 MiB)


def _round_up(v, m):
    return (v + m - 1) // m * m


def _pick_hblock(h):
    """Largest row-block <= MAX_HBLK that divides h (bounds VMEM for tall images)."""
    for cand in range(min(h, MAX_HBLK), 0, -1):
        if h % cand == 0:
            return cand
    return 1


def _convt_silu_kernel(x_ref, w_ref, b_ref, o_ref):
    """One grid step = one output-row parity x one block of output-row pairs.

    x_ref: (TH_G, W_pad, 2*C_PAD)  input rows, two kh taps pre-packed on the K axis
    w_ref: (KW, 2*C_PAD, C_PAD)    this parity's packed weights [kw tap, K, cout]
    b_ref: (1, C_PAD)              bias
    o_ref: (TH_G, OW_al, C_PAD)    this parity's output rows (lane dense, aligned)
    """
    th_g, w_pad, _ = x_ref.shape
    ow_al = o_ref.shape[1]

    def row(r, carry):
        lhs = x_ref[r]                                            # (W_pad, 256)
        # Register accumulation over the 4 width taps; the per-tap width shift is a
        # cheap XLU sublane roll on the matmul *result* (no unaligned slice copies).
        acc = jnp.dot(lhs, w_ref[0], preferred_element_type=jnp.float32)
        for t in range(1, KW):
            y = jnp.dot(lhs, w_ref[t], preferred_element_type=jnp.float32)
            # out[ow] needs y[ow + t]; the circular wrap only reaches columns
            # >= w_pad - 3 >= ow_al + 5, all of which are cropped below.
            acc = acc + pltpu.roll(y, shift=w_pad - t, axis=0)
        v = (acc + b_ref[...])[:ow_al]                            # aligned slice (free)
        v = v * jax.nn.sigmoid(v)                                 # SiLU
        o_ref[r] = v.astype(o_ref.dtype)
        return carry

    jax.lax.fori_loop(0, th_g, row, 0)


def prepare_params(w, b):
    """Hoisted once-per-model parameter packing.

    Returns
      w_pack: (2, KW, 2*C_PAD, C_PAD)  [parity, kw tap, packed K (2 kh taps x Cin), Cout]
      b_pad:  (1, C_PAD)
    """
    # transposed conv == stride-1 correlation with the spatially flipped kernel
    wt = jnp.transpose(w[:, :, ::-1, ::-1], (2, 3, 0, 1))        # (KH, KW, Ci, Co)
    # flipped-kh index = 2*s + p : s = position in the (row, row+1) pair, p = parity
    wt = wt.reshape(2, 2, KW, CIN, COUT)                         # (s, p, t, ci, co)
    wt = jnp.transpose(wt, (1, 2, 0, 3, 4))                      # (p, t, s, ci, co)
    wt = jnp.pad(wt, ((0, 0), (0, 0), (0, 0),
                      (0, C_PAD - CIN), (0, C_PAD - COUT)))
    w_pack = wt.reshape(2, KW, 2 * C_PAD, C_PAD)                 # K = s*128 + ci
    b_pad = jnp.pad(b, (0, C_PAD - COUT)).reshape(1, C_PAD)
    return w_pack, b_pad


@jax.jit
def conv_transpose_silu(x, w_pack, b_pad):
    """x: NCHW (1, CIN, H, W); w_pack/b_pad from prepare_params -> NCHW output."""
    N, C, H, W = x.shape
    assert N == 1 and C == CIN

    OH = (H - 1) * SH - 2 * PH + KH          # = 2*H
    OW = (W - 1) * SW - 2 * PW + KW          # = W + 1
    OW_al = _round_up(OW, 8)                 # sublane-aligned output width
    W_pad = OW_al + 8                        # padded input width (>= OW_al + 3, mult of 8)
    pad_l = KW - 1 - PW                      # = 2 (left width pad of the correlation)

    # NCHW -> HWC, pad: 1 row top/bottom, 2 cols left (rest right), channels -> 128.
    x_hwc = jnp.transpose(x[0], (1, 2, 0))
    x_pad = jnp.pad(x_hwc, ((1, 1), (pad_l, W_pad - W - pad_l), (0, C_PAD - C)))

    # Hoisted K=256 packing: row r of parity p holds [x_pad[p+r], x_pad[p+r+1]] along
    # the channel axis, so the kernel never concatenates or gathers input rows.
    x_pack = jnp.stack(
        [jnp.concatenate([x_pad[p:p + H], x_pad[p + 1:p + H + 1]], axis=-1)
         for p in (0, 1)], axis=0)                                # (2, H, W_pad, 256)

    TH_G = _pick_hblock(H)                   # output-row pairs per grid step
    n_h = H // TH_G

    out = pl.pallas_call(
        _convt_silu_kernel,
        out_shape=jax.ShapeDtypeStruct((H, 2, OW_al, C_PAD), x.dtype),
        grid=(2, n_h),                                            # (parity, row block)
        in_specs=[
            pl.BlockSpec((None, TH_G, W_pad, K_PACK), lambda p, h: (p, h, 0, 0)),
            pl.BlockSpec((None, KW, K_PACK, C_PAD), lambda p, h: (p, 0, 0, 0)),
            pl.BlockSpec((1, C_PAD), lambda p, h: (0, 0)),
        ],
        out_specs=pl.BlockSpec((TH_G, None, OW_al, C_PAD), lambda p, h: (h, p, 0, 0)),
        compiler_params=pltpu.CompilerParams(
            dimension_semantics=("parallel", "parallel")),        # megacore on v7x
    )(x_pack, w_pack, b_pad)

    # interleave parities; transpose the lane-dense slab first, crop afterwards.
    out = out.reshape(OH, OW_al, C_PAD)
    out = jnp.transpose(out, (2, 0, 1))[:COUT, :, :OW]
    return out[None]


def _reference(x, w, b):
    """Pure-JAX reference: transposed conv via lhs-dilated correlation + SiLU."""
    pad_h = KH - 1 - PH
    pad_w = KW - 1 - PW
    lhs = jnp.transpose(x, (0, 2, 3, 1))                         # NHWC
    rhs = jnp.transpose(w[:, :, ::-1, ::-1], (2, 3, 0, 1))       # HWIO, flipped
    y = jax.lax.conv_general_dilated(
        lhs, rhs,
        window_strides=(1, 1),
        padding=((pad_h, pad_h), (pad_w, pad_w)),
        lhs_dilation=(SH, SW),
        dimension_numbers=("NHWC", "HWIO", "NHWC"),
    )
    y = y + b[None, None, None, :]
    y = y * jax.nn.sigmoid(y)
    return jnp.transpose(y, (0, 3, 1, 2))


if __name__ == "__main__":
    key = jax.random.PRNGKey(0)
    k_x, k_w, k_b = jax.random.split(key, 3)

    # input shape matching the original module spec
    H, W = 16, 59
    x1 = jax.random.normal(k_x, (1, CIN, H, W), jnp.float32)

    # deterministic parameter init (mimicking PyTorch's uniform fan-in init)
    fan_in = CIN * KH * KW
    bound = 1.0 / np.sqrt(fan_in)
    w = jax.random.uniform(k_w, (CIN, COUT, KH, KW), jnp.float32, -bound, bound)
    b = jax.random.uniform(k_b, (COUT,), jnp.float32, -bound, bound)

    # parameter packing hoisted out of the per-call hot path (done once per model)
    w_pack, b_pad = jax.block_until_ready(prepare_params(w, b))

    out = jax.block_until_ready(conv_transpose_silu(x1, w_pack, b_pad))

    ref = jax.block_until_ready(_reference(x1, w, b))
    expected_shape = (1, COUT, (H - 1) * SH - 2 * PH + KH, (W - 1) * SW - 2 * PW + KW)
    assert out.shape == expected_shape, (out.shape, expected_shape)
    np.testing.assert_allclose(np.asarray(out), np.asarray(ref), rtol=1e-4, atol=1e-4)

    print("KERNEL_OK")
</pallas_src>

<mosaic_0001>
module attributes {stable_mosaic.version = 11 : i64} {
  func.func @_convt_silu_kernel(%arg0: i32, %arg1: i32, %arg2: memref<1x16x72x256xf32, #tpu.memory_space<vmem>>, %arg3: memref<1x4x256x128xf32, #tpu.memory_space<vmem>>, %arg4: memref<1x128xf32, #tpu.memory_space<vmem>>, %arg5: memref<16x1x64x128xf32, #tpu.memory_space<vmem>>) attributes {dimension_semantics = [#tpu.dimension_semantics<parallel>, #tpu.dimension_semantics<parallel>], iteration_bounds = array<i64: 2, 1>, scalar_prefetch = 0 : i64, scratch_operands = 0 : i64, tpu.core_type = #tpu.core_type<tc>, window_params = [{transform_indices = @transform_0, window_bounds = array<i64: 1, 16, 72, 256>}, {transform_indices = @transform_1, window_bounds = array<i64: 1, 4, 256, 128>}, {pipeline_mode = #tpu.pipeline_mode<synchronous>, transform_indices = @transform_2, window_bounds = array<i64: 1, 128>}, {transform_indices = @transform_3, window_bounds = array<i64: 16, 1, 64, 128>}]} {
    %c0_i32 = arith.constant 0 : i32
    %c16_i32 = arith.constant 16 : i32
    %0 = arith.addi %c0_i32, %c16_i32 : i32
    %c1_i32 = arith.constant 1 : i32
    scf.for %arg6 = %c0_i32 to %0 step %c1_i32  : i32 {
      %c0 = arith.constant 0 : index
      %1 = arith.index_cast %arg6 : i32 to index
      %c0_1 = arith.constant 0 : index
      %c0_2 = arith.constant 0 : index
      %2 = vector.load %arg2[%c0, %1, %c0_1, %c0_2] : memref<1x16x72x256xf32, #tpu.memory_space<vmem>>, vector<1x1x72x256xf32>
      %3 = vector.shape_cast %2 : vector<1x1x72x256xf32> to vector<72x256xf32>
      %c0_3 = arith.constant 0 : index
      %c0_4 = arith.constant 0 : index
      %c0_5 = arith.constant 0 : index
      %c0_6 = arith.constant 0 : index
      %4 = vector.load %arg3[%c0_3, %c0_4, %c0_5, %c0_6] : memref<1x4x256x128xf32, #tpu.memory_space<vmem>>, vector<1x1x256x128xf32>
      %5 = vector.shape_cast %4 : vector<1x1x256x128xf32> to vector<256x128xf32>
      %cst = arith.constant dense<0.000000e+00> : vector<72x128xf32>
      %6 = tpu.matmul %3, %5, %cst {dimension_numbers = #tpu.dot_dimension_numbers<[1], [0], [0], [1], [0, 0, 1, 1], [], []>} : vector<72x256xf32>, vector<256x128xf32>, vector<72x128xf32> -> vector<72x128xf32>
      %c0_7 = arith.constant 0 : index
      %c1 = arith.constant 1 : index
      %c0_8 = arith.constant 0 : index
      %c0_9 = arith.constant 0 : index
      %7 = vector.load %arg3[%c0_7, %c1, %c0_8, %c0_9] : memref<1x4x256x128xf32, #tpu.memory_space<vmem>>, vector<1x1x256x128xf32>
      %8 = vector.shape_cast %7 : vector<1x1x256x128xf32> to vector<256x128xf32>
      %cst_10 = arith.constant dense<0.000000e+00> : vector<72x128xf32>
      %9 = tpu.matmul %3, %8, %cst_10 {dimension_numbers = #tpu.dot_dimension_numbers<[1], [0], [0], [1], [0, 0, 1, 1], [], []>} : vector<72x256xf32>, vector<256x128xf32>, vector<72x128xf32> -> vector<72x128xf32>
      %c71_i32 = arith.constant 71 : i32
      %10 = tpu.dynamic_rotate %9 by %c71_i32 dim 0 : vector<72x128xf32>, i32 -> vector<72x128xf32>
      %11 = arith.addf %6, %10 : vector<72x128xf32>
      %c0_11 = arith.constant 0 : index
      %c2 = arith.constant 2 : index
      %c0_12 = arith.constant 0 : index
      %c0_13 = arith.constant 0 : index
      %12 = vector.load %arg3[%c0_11, %c2, %c0_12, %c0_13] : memref<1x4x256x128xf32, #tpu.memory_space<vmem>>, vector<1x1x256x128xf32>
      %13 = vector.shape_cast %12 : vector<1x1x256x128xf32> to vector<256x128xf32>
      %cst_14 = arith.constant dense<0.000000e+00> : vector<72x128xf32>
      %14 = tpu.matmul %3, %13, %cst_14 {dimension_numbers = #tpu.dot_dimension_numbers<[1], [0], [0], [1], [0, 0, 1, 1], [], []>} : vector<72x256xf32>, vector<256x128xf32>, vector<72x128xf32> -> vector<72x128xf32>
      %c70_i32 = arith.constant 70 : i32
      %15 = tpu.dynamic_rotate %14 by %c70_i32 dim 0 : vector<72x128xf32>, i32 -> vector<72x128xf32>
      %16 = arith.addf %11, %15 : vector<72x128xf32>
      %c0_15 = arith.constant 0 : index
      %c3 = arith.constant 3 : index
      %c0_16 = arith.constant 0 : index
      %c0_17 = arith.constant 0 : index
      %17 = vector.load %arg3[%c0_15, %c3, %c0_16, %c0_17] : memref<1x4x256x128xf32, #tpu.memory_space<vmem>>, vector<1x1x256x128xf32>
      %18 = vector.shape_cast %17 : vector<1x1x256x128xf32> to vector<256x128xf32>
      %cst_18 = arith.constant dense<0.000000e+00> : vector<72x128xf32>
      %19 = tpu.matmul %3, %18, %cst_18 {dimension_numbers = #tpu.dot_dimension_numbers<[1], [0], [0], [1], [0, 0, 1, 1], [], []>} : vector<72x256xf32>, vector<256x128xf32>, vector<72x128xf32> -> vector<72x128xf32>
      %c69_i32 = arith.constant 69 : i32
      %20 = tpu.dynamic_rotate %19 by %c69_i32 dim 0 : vector<72x128xf32>, i32 -> vector<72x128xf32>
      %21 = arith.addf %16, %20 : vector<72x128xf32>
      %c0_19 = arith.constant 0 : index
      %c0_20 = arith.constant 0 : index
      %22 = vector.load %arg4[%c0_19, %c0_20] : memref<1x128xf32, #tpu.memory_space<vmem>>, vector<1x128xf32>
      %23 = vector.broadcast %22 : vector<1x128xf32> to vector<72x128xf32>
      %24 = arith.addf %21, %23 : vector<72x128xf32>
      %25 = vector.extract_strided_slice %24 {offsets = [0, 0], sizes = [64, 128], strides = [1, 1]} : vector<72x128xf32> to vector<64x128xf32>
      %26 = arith.negf %25 : vector<64x128xf32>
      %27 = math.exp %26 : vector<64x128xf32>
      %cst_21 = arith.constant 1.000000e+00 : f32
      %28 = vector.broadcast %cst_21 : f32 to vector<64x128xf32>
      %29 = arith.addf %28, %27 : vector<64x128xf32>
      %30 = arith.divf %28, %29 : vector<64x128xf32>
      %31 = arith.mulf %25, %30 : vector<64x128xf32>
      %32 = arith.index_cast %arg6 : i32 to index
      %c0_22 = arith.constant 0 : index
      %c0_23 = arith.constant 0 : index
      %c0_24 = arith.constant 0 : index
      %33 = vector.load %arg5[%32, %c0_22, %c0_23, %c0_24] : memref<16x1x64x128xf32, #tpu.memory_space<vmem>>, vector<1x1x64x128xf32>
      %34 = vector.shape_cast %33 : vector<1x1x64x128xf32> to vector<64x128xf32>
      %35 = vector.shape_cast %31 : vector<64x128xf32> to vector<1x1x64x128xf32>
      tpu.vector_store %arg5[%32, %c0_22, %c0_23, %c0_24], %35 {strides = array<i32>} : memref<16x1x64x128xf32, #tpu.memory_space<vmem>>, vector<1x1x64x128xf32>,
    }
    %c16_i32_0 = arith.constant 16 : i32
    return
  }
  func.func @transform_0(%arg0: i32, %arg1: i32) -> (i32, i32, i32, i32) {
    %c0_i32 = arith.constant 0 : i32
    %c0_i32_0 = arith.constant 0 : i32
    %c0_i32_1 = arith.constant 0 : i32
    return %arg0, %arg1, %c0_i32, %c0_i32_0 : i32, i32, i32, i32
  }
  func.func @transform_1(%arg0: i32, %arg1: i32) -> (i32, i32, i32, i32) {
    %c0_i32 = arith.constant 0 : i32
    %c0_i32_0 = arith.constant 0 : i32
    %c0_i32_1 = arith.constant 0 : i32
    %c0_i32_2 = arith.constant 0 : i32
    return %arg0, %c0_i32, %c0_i32_0, %c0_i32_1 : i32, i32, i32, i32
  }
  func.func @transform_2(%arg0: i32, %arg1: i32) -> (i32, i32) {
    %c0_i32 = arith.constant 0 : i32
    %c0_i32_0 = arith.constant 0 : i32
    %c0_i32_1 = arith.constant 0 : i32
    return %c0_i32, %c0_i32_0 : i32, i32
  }
  func.func @transform_3(%arg0: i32, %arg1: i32) -> (i32, i32, i32, i32) {
    %c0_i32 = arith.constant 0 : i32
    %c0_i32_0 = arith.constant 0 : i32
    %c0_i32_1 = arith.constant 0 : i32
    return %arg1, %arg0, %c0_i32, %c0_i32_0 : i32, i32, i32, i32
  }
}

</mosaic_0001>

<bundles_post_ra>
// kernel: conv_transpose_silu.1
= control target key start
LH: loop header
LB: loop body
LE: loop exit
PB: predicated region body
PF: predicated region fallthrough
CT: control target
= control target key end

     0   :  { %s2124_s12 = smov 0   ;;  %s2126_s13 = smov 0   ;;  %s2884_s0 = inlined_call_operand.vmem [shape: f32[2,16,72,256], index: 0, kind: input, shape index: {}]   ;;  %s2885_s1 = inlined_call_operand.vmem [shape: f32[2,4,256,128], index: 1, kind: input, shape index: {}]   ;;  %s2886_s2 = inlined_call_operand.vmem [shape: f32[1,128], index: 2, kind: input, shape index: {}]   ;;  %s2887_s3 = inlined_call_operand.vmem [shape: f32[16,2,64,128], index: 3, kind: output, shape index: {}]  }
   0x1   :  { %s2128_s14 = smov 0   ;;  %s2130_s15 = smov 0  }
   0x2   :  { %s2132_s16 = smov 0  }
   0x3 LB: > { %s1615_s17 = sadd.s32 4294967295, %s2098_s16   ;;  %s25_s18 = sadd.s32 1, %s2094_s15  ;;  %s2098_s16 = sphi %s2132_s16, %s13_s16   ;;  %s2094_s15 = sphi %s2130_s15, %s2892_s15   ;;  %s2090_s14 = sphi %s2128_s14, %s2891_s14   ;;  %s2086_s13 = sphi %s2126_s13, %s2890_s13   ;;  %s2082_s12 = sphi %s2124_s12, %s2889_s12  }
   0x4   : > { %p27_p0 = scmp.ge.s32.totalorder %s25_s18, 2  ;;  %s109_s19 = sadd.s32 1, %s2086_s13 }
   0x5   : > { %p119_p1 = scmp.ne.s32.totalorder %s2086_s13, %s2082_s12  ;;  %p120_p2 = scmp.eq.s32.totalorder %s1615_s17, 1 }
   0x6   : > { %s2894_s18 = smov (%p27_p0, %s25_s18), 0  ;;  %p1619_p4 = scmp.ge.s32.totalorder %s2098_s16, 1 }
   0x7   : > { %p2153_p3 = por %p120_p2, %p119_p1  ;;  %s105_s21 = ssub.s32 %s2094_s15, %s2894_s18 }
   0x8   : > { %p169_p5 = scmp.lt.s32.totalorder %s2098_s16, 3  ;;  %p107_p6 = scmp.eq.s32.totalorder %s105_s21, 0 }
   0xa   : > { %p170_p7 = pnand %p1619_p4, %p169_p5 }
   0xb   : > { %s2162_s22 = scalar_select %p107_p6, %s2086_s13, %s109_s19  }
   0xc   : > { %173 = sbr.rel (%p170_p7) target bundleno = 453 (0x1c5), region = 32  ;;  %s199_s23 = sand.u32 (!%p170_p7), 1, %s2082_s12  }
   0xd   : > { %p203_p8 = scmp.lt.s32.totalorder (!%p170_p7), %s2090_s14, 1  ;;  %s1620_s24 = sshll.u32 (!%p170_p7), %s199_s23, 10 }
   0xe   : > { %s2176_s7 = scalar_lea.vmem (!%p170_p7), [#allocation2], %s1620_s24  ;;  %s2178_s8 = smov (!%p170_p7), 0  }
  0x11   : > { %s204_s25 = scalar_select %p203_p8, %s2090_s14, 1 }
  0x13   : > { %s1975_s26 = smul.u32 2304, %s204_s25  ;;  %s1736_s27 = sshll.u32 %s204_s25, 10 }
  0x14   : > { %s2169_s30 = scalar_lea.vmem %s2885_s1, %s1736_s27 }
  0x15   : > { %s2174_s6 = scalar_lea.vmem %s2884_s0, %s1975_s26 }
  0x16 LB: >> { %v1656_v0 = vld [vmem:[%s2169_s30 + $0x1f8] sm:$0xff]  ;;  %v1655_v4 = vld [vmem:[%s2169_s30 + $0x1f0] sm:$0xff]  ;;  %v1654_v8 = vld [vmem:[%s2169_s30 + $0x1e8] sm:$0xff]  ;;  %s1737_s9 = smul.u32 144, %s2102_s8  ;;  %s1730_s17 = sshll.u32 %s2102_s8, 6  ;;  %s2102_s8 = sphi %s2178_s8, %s224_s8  }
  0x17   : >> { %v277_v1 = vld [vmem:[%s2169_s30 + $0xf8] sm:$0xff]  ;;  %1739 = vmatprep.subr.mxu0 %v1656_v0  ;;  %v276_v5 = vld [vmem:[%s2169_s30 + $0xf0] sm:$0xff]  ;;  %v275_v9 = vld [vmem:[%s2169_s30 + $0xe8] sm:$0xff]  ;;  %s2587_s19 = scalar_lea.vmem %s2176_s7, %s1730_s17 [#allocation2]  ;;  %s224_s8 = sadd.s32 1, %s2102_s8  }
  0x18   : >> { %v1640_v2 = vld [vmem:[%s2169_s30 + $0x178] sm:$0xff]  ;;  %1798 = vmatprep.subr.mxu1 %v277_v1  ;;  %v1639_v6 = vld [vmem:[%s2169_s30 + $0x170] sm:$0xff]  ;;  %v1638_v10 = vld [vmem:[%s2169_s30 + $0x168] sm:$0xff]  ;;  %s2243_s10 = scalar_lea.vmem %s2174_s6, %s1737_s9  ;;  %p221_p9 = scmp.ge.s32.totalorder %s224_s8, 16  }
  0x19   : >> { %v261_v3 = vld [vmem:[%s2169_s30 + $0x78] sm:$0xff]  ;;  %1740 = vmatpush3.msra.mxu0 %v1640_v2  ;;  %v260_v7 = vld [vmem:[%s2169_s30 + $0x70] sm:$0xff]  ;;  %v259_v11 = vld [vmem:[%s2169_s30 + $0x68] sm:$0xff] }
  0x1a   : >> { %1799 = vmatpush3.msra.mxu1 %v261_v3  ;;  %1741 = vmatprep.subr.mxu0 %v1655_v4  ;;  %v1653_v12 = vld [vmem:[%s2169_s30 + $0x1e0] sm:$0xff]  ;;  %v1652_v16 = vld [vmem:[%s2169_s30 + $0x1d8] sm:$0xff]  ;;  %v1651_v20 = vld [vmem:[%s2169_s30 + $0x1d0] sm:$0xff] }
  0x1b   : >> { %1800 = vmatprep.subr.mxu1 %v276_v5  ;;  %1742 = vmatpush3.msra.mxu0 %v1639_v6  ;;  %v274_v13 = vld [vmem:[%s2169_s30 + $0xe0] sm:$0xff]  ;;  %v273_v17 = vld [vmem:[%s2169_s30 + $0xd8] sm:$0xff]  ;;  %v272_v21 = vld [vmem:[%s2169_s30 + $0xd0] sm:$0xff] }
  0x1c   : >> { %1801 = vmatpush3.msra.mxu1 %v260_v7  ;;  %1743 = vmatprep.subr.mxu0 %v1654_v8  ;;  %v1637_v14 = vld [vmem:[%s2169_s30 + $0x160] sm:$0xff]  ;;  %v1636_v18 = vld [vmem:[%s2169_s30 + $0x158] sm:$0xff]  ;;  %v1635_v22 = vld [vmem:[%s2169_s30 + $0x150] sm:$0xff] }
  0x1d   : >> { %1802 = vmatprep.subr.mxu1 %v275_v9  ;;  %v258_v15 = vld [vmem:[%s2169_s30 + $0x60] sm:$0xff]  ;;  %1744 = vmatpush3.msra.mxu0 %v1638_v10  ;;  %v257_v19 = vld [vmem:[%s2169_s30 + $0x58] sm:$0xff]  ;;  %v256_v23 = vld [vmem:[%s2169_s30 + $0x50] sm:$0xff] }
  0x1e   : >> { %1803 = vmatpush3.msra.mxu1 %v259_v11  ;;  %1745 = vmatprep.subr.mxu0 %v1653_v12  ;;  %v1650_v24 = vld [vmem:[%s2169_s30 + $0x1c8] sm:$0xff]  ;;  %v1649_v28 = vld [vmem:[%s2169_s30 + $0x1c0] sm:$0xff]  ;;  %v1648_v32 = vld [vmem:[%s2169_s30 + $0x1b8] sm:$0xff] }
  0x1f   : >> { %1804 = vmatprep.subr.mxu1 %v274_v13  ;;  %1746 = vmatpush3.msra.mxu0 %v1637_v14  ;;  %v271_v25 = vld [vmem:[%s2169_s30 + $0xc8] sm:$0xff]  ;;  %v270_v29 = vld [vmem:[%s2169_s30 + $0xc0] sm:$0xff]  ;;  %v269_v33 = vld [vmem:[%s2169_s30 + $0xb8] sm:$0xff] }
  0x20   : >> { %1805 = vmatpush3.msra.mxu1 %v258_v15  ;;  %1747 = vmatprep.subr.mxu0 %v1652_v16  ;;  %v1634_v26 = vld [vmem:[%s2169_s30 + $0x148] sm:$0xff]  ;;  %v1633_v30 = vld [vmem:[%s2169_s30 + $0x140] sm:$0xff]  ;;  %v1632_v34 = vld [vmem:[%s2169_s30 + $0x138] sm:$0xff] }
  0x21   : >> { %1806 = vmatprep.subr.mxu1 %v273_v17  ;;  %1748 = vmatpush3.msra.mxu0 %v1636_v18  ;;  %v255_v27 = vld [vmem:[%s2169_s30 + $0x48] sm:$0xff]  ;;  %v254_v31 = vld [vmem:[%s2169_s30 + $0x40] sm:$0xff]  ;;  %v253_v35 = vld [vmem:[%s2169_s30 + $0x38] sm:$0xff] }
  0x22   : >> { %1807 = vmatpush3.msra.mxu1 %v257_v19  ;;  %1749 = vmatprep.subr.mxu0 %v1651_v20  ;;  %v1647_v36 = vld [vmem:[%s2169_s30 + $0x1b0] sm:$0xff]  ;;  %v1646_v40 = vld [vmem:[%s2169_s30 + $0x1a8] sm:$0xff]  ;;  %v1645_v44 = vld [vmem:[%s2169_s30 + $0x1a0] sm:$0xff] }
  0x23   : >> { %1808 = vmatprep.subr.mxu1 %v272_v21  ;;  %1750 = vmatpush3.msra.mxu0 %v1635_v22  ;;  %v268_v37 = vld [vmem:[%s2169_s30 + $0xb0] sm:$0xff]  ;;  %v267_v41 = vld [vmem:[%s2169_s30 + $0xa8] sm:$0xff]  ;;  %v266_v45 = vld [vmem:[%s2169_s30 + $0xa0] sm:$0xff] }
  0x24   : >> { %1809 = vmatpush3.msra.mxu1 %v256_v23  ;;  %1751 = vmatprep.subr.mxu0 %v1650_v24  ;;  %v1631_v38 = vld [vmem:[%s2169_s30 + $0x130] sm:$0xff]  ;;  %v1630_v42 = vld [vmem:[%s2169_s30 + $0x128] sm:$0xff]  ;;  %v1629_v46 = vld [vmem:[%s2169_s30 + $0x120] sm:$0xff] }
  0x25   : >> { %1810 = vmatprep.subr.mxu1 %v271_v25  ;;  %1752 = vmatpush3.msra.mxu0 %v1634_v26  ;;  %v252_v39 = vld [vmem:[%s2169_s30 + $0x30] sm:$0xff]  ;;  %v251_v43 = vld [vmem:[%s2169_s30 + $0x28] sm:$0xff]  ;;  %v250_v47 = vld [vmem:[%s2169_s30 + $0x20] sm:$0xff] }
  0x26   : >> { %1811 = vmatpush3.msra.mxu1 %v255_v27  ;;  %1753 = vmatprep.subr.mxu0 %v1649_v28  ;;  %v1644_v48 = vld [vmem:[%s2169_s30 + $0x198] sm:$0xff]  ;;  %v1643_v52 = vld [vmem:[%s2169_s30 + $0x190] sm:$0xff]  ;;  %v1642_v56 = vld [vmem:[%s2169_s30 + $0x188] sm:$0xff] }
  0x27   : >> { %1812 = vmatprep.subr.mxu1 %v270_v29  ;;  %1754 = vmatpush3.msra.mxu0 %v1633_v30  ;;  %v265_v49 = vld [vmem:[%s2169_s30 + $0x98] sm:$0xff]  ;;  %v264_v53 = vld [vmem:[%s2169_s30 + $0x90] sm:$0xff]  ;;  %v263_v57 = vld [vmem:[%s2169_s30 + $0x88] sm:$0xff] }
  0x28   : >> { %1813 = vmatpush3.msra.mxu1 %v254_v31  ;;  %1755 = vmatprep.subr.mxu0 %v1648_v32  ;;  %v1628_v50 = vld [vmem:[%s2169_s30 + $0x118] sm:$0xff]  ;;  %v1627_v54 = vld [vmem:[%s2169_s30 + $0x110] sm:$0xff]  ;;  %v1626_v58 = vld [vmem:[%s2169_s30 + $0x108] sm:$0xff] }
  0x29   : >> { %1814 = vmatprep.subr.mxu1 %v269_v33  ;;  %1756 = vmatpush3.msra.mxu0 %v1632_v34  ;;  %v249_v51 = vld [vmem:[%s2169_s30 + $0x18] sm:$0xff]  ;;  %v248_v55 = vld [vmem:[%s2169_s30 + $0x10] sm:$0xff]  ;;  %v247_v59 = vld [vmem:[%s2169_s30 + $0x8] sm:$0xff] }
  0x2a   : >> { %1815 = vmatpush3.msra.mxu1 %v253_v35  ;;  %1757 = vmatprep.subr.mxu0 %v1647_v36  ;;  %v1641_v60 = vld [vmem:[%s2169_s30 + $0x180] sm:$0xff]  ;;  %v2251_v63 = vld [vmem:[%s2243_s10 + $0x8] sm:$0xff]  ;;  %v1688_v2 = vld [vmem:[%s2169_s30 + $0x2f8] sm:$0xff] }
  0x2b   : >> { %1816 = vmatprep.subr.mxu1 %v268_v37  ;;  %1758 = vmatpush3.msra.mxu0 %v1631_v38  ;;  %v262_v61 = vld [vmem:[%s2169_s30 + $0x80] sm:$0xff]  ;;  %v1720_v3 = vld [vmem:[%s2169_s30 + $0x3f8] sm:$0xff]  ;;  %v1687_v6 = vld [vmem:[%s2169_s30 + $0x2f0] sm:$0xff] }
  0x2c   : >> { %1817 = vmatpush3.msra.mxu1 %v252_v39  ;;  %1759 = vmatprep.subr.mxu0 %v1646_v40  ;;  %v1625_v62 = vld [vmem:[%s2169_s30 + $0x100] sm:$0xff]  ;;  %v1672_v4 = vld [vmem:[%s2169_s30 + $0x278] sm:$0xff]  ;;  %v2270_v8 = vld [vmem:[%s2243_s10 + $0x10] sm:$0xff] }
  0x2d   : >> { %1818 = vmatprep.subr.mxu1 %v267_v41  ;;  %1760 = vmatpush3.msra.mxu0 %v1630_v42  ;;  %v246_v0 = vld [vmem:[%s2169_s30] sm:$0xff]  ;;  %v2263_v5 = vld [vmem:[%s2243_s10 + $0x18] sm:$0xff]  ;;  %v1671_v9 = vld [vmem:[%s2169_s30 + $0x270] sm:$0xff] }
  0x2e   : >> { %1819 = vmatpush3.msra.mxu1 %v251_v43  ;;  %1761 = vmatprep.subr.mxu0 %v1645_v44  ;;  %v2255_v1 = vld [vmem:[%s2243_s10] sm:$0xff]  ;;  %v1704_v7 = vld [vmem:[%s2169_s30 + $0x378] sm:$0xff]  ;;  %v1686_v10 = vld [vmem:[%s2169_s30 + $0x2e8] sm:$0xff] }
  0x2f   : >> { %1820 = vmatprep.subr.mxu1 %v266_v45  ;;  %1762 = vmatpush3.msra.mxu0 %v1629_v46  ;;  %v1719_v11 = vld [vmem:[%s2169_s30 + $0x3f0] sm:$0xff]  ;;  %v1670_v12 = vld [vmem:[%s2169_s30 + $0x268] sm:$0xff]  ;;  %v1685_v15 = vld [vmem:[%s2169_s30 + $0x2e0] sm:$0xff] }
  0x30   : >> { %1821 = vmatpush3.msra.mxu1 %v250_v47  ;;  %1763 = vmatprep.subr.mxu0 %v1644_v48  ;;  %v1703_v13 = vld [vmem:[%s2169_s30 + $0x370] sm:$0xff]  ;;  %v2282_v14 = vld [vmem:[%s2243_s10 + $0x28] sm:$0xff]  ;;  %v2287_v17 = vld [vmem:[%s2243_s10 + $0x20] sm:$0xff] }
  0x31   : >> { %1822 = vmatprep.subr.mxu1 %v265_v49  ;;  %1764 = vmatpush3.msra.mxu0 %v1628_v50  ;;  %v1718_v16 = vld [vmem:[%s2169_s30 + $0x3e8] sm:$0xff]  ;;  %v1669_v18 = vld [vmem:[%s2169_s30 + $0x260] sm:$0xff]  ;;  %v1684_v20 = vld [vmem:[%s2169_s30 + $0x2d8] sm:$0xff] }
  0x32   : >> { %1823 = vmatpush3.msra.mxu1 %v249_v51  ;;  %1765 = vmatprep.subr.mxu0 %v1643_v52  ;;  %v1702_v19 = vld [vmem:[%s2169_s30 + $0x368] sm:$0xff]  ;;  %v1717_v21 = vld [vmem:[%s2169_s30 + $0x3e0] sm:$0xff]  ;;  %v1668_v22 = vld [vmem:[%s2169_s30 + $0x258] sm:$0xff] }
  0x33   : >> { %1824 = vmatprep.subr.mxu1 %v264_v53  ;;  %1766 = vmatpush3.msra.mxu0 %v1627_v54  ;;  %v1701_v23 = vld [vmem:[%s2169_s30 + $0x360] sm:$0xff]  ;;  %v2300_v24 = vld [vmem:[%s2243_s10 + $0x38] sm:$0xff]  ;;  %v2304_v26 = vld [vmem:[%s2243_s10 + $0x30] sm:$0xff] }
  0x34   : >> { %1825 = vmatpush3.msra.mxu1 %v248_v55  ;;  %1767 = vmatprep.subr.mxu0 %v1642_v56  ;;  %v1716_v25 = vld [vmem:[%s2169_s30 + $0x3d8] sm:$0xff]  ;;  %v1683_v27 = vld [vmem:[%s2169_s30 + $0x2d0] sm:$0xff]  ;;  %v1682_v30 = vld [vmem:[%s2169_s30 + $0x2c8] sm:$0xff] }
  0x35   : >> { %1826 = vmatprep.subr.mxu1 %v263_v57  ;;  %1768 = vmatpush3.msra.mxu0 %v1626_v58  ;;  %v1700_v28 = vld [vmem:[%s2169_s30 + $0x358] sm:$0xff]  ;;  %v1667_v29 = vld [vmem:[%s2169_s30 + $0x250] sm:$0xff]  ;;  %v2316_v32 = vld [vmem:[%s2243_s10 + $0x48] sm:$0xff] }
  0x36   : >> { %1827 = vmatpush3.msra.mxu1 %v247_v59  ;;  %1769 = vmatprep.subr.mxu0 %v1641_v60  ;;  %v1715_v31 = vld [vmem:[%s2169_s30 + $0x3d0] sm:$0xff]  ;;  %v1666_v33 = vld [vmem:[%s2169_s30 + $0x248] sm:$0xff]  ;;  %v2321_v35 = vld [vmem:[%s2243_s10 + $0x40] sm:$0xff] }
  0x37   : >> { %1828 = vmatprep.subr.mxu1 %v262_v61  ;;  %1770 = vmatpush3.msra.mxu0 %v1625_v62  ;;  %v1699_v34 = vld [vmem:[%s2169_s30 + $0x350] sm:$0xff]  ;;  %v1681_v36 = vld [vmem:[%s2169_s30 + $0x2c0] sm:$0xff]  ;;  %v1714_v37 = vld [vmem:[%s2169_s30 + $0x3c8] sm:$0xff] }
  0x38   : >> { %375 = vmatprep.mubr.f32.mxu0 %v2251_v63  ;;  %1829 = vmatpush3.msra.mxu1 %v246_v0  ;;  %v1665_v38 = vld [vmem:[%s2169_s30 + $0x240] sm:$0xff]  ;;  %v1698_v39 = vld [vmem:[%s2169_s30 + $0x348] sm:$0xff]  ;;  %v1680_v40 = vld [vmem:[%s2169_s30 + $0x2b8] sm:$0xff] }
  0x39   : >> { %505 = vmatprep.mubr.f32.mxu1 %v2251_v63  ;;  %376 = vmatmul.mubr.f32.vlgmr.msra.gmra.mxu0 %v2255_v1  ;;  %v1713_v41 = vld [vmem:[%s2169_s30 + $0x3c0] sm:$0xff]  ;;  %v2334_v42 = vld [vmem:[%s2243_s10 + $0x58] sm:$0xff]  ;;  %v2339_v45 = vld [vmem:[%s2243_s10 + $0x50] sm:$0xff] }
  0x3a   : >> { %506 = vmatmul.mubr.f32.vlgmr.msra.gmra.mxu1 %v2255_v1  ;;  %1857 = vmatprep.subr.mxu0 %v1688_v2  ;;  %v1664_v43 = vld [vmem:[%s2169_s30 + $0x238] sm:$0xff]  ;;  %v1697_v44 = vld [vmem:[%s2169_s30 + $0x340] sm:$0xff]  ;;  %v1679_v47 = vld [vmem:[%s2169_s30 + $0x2b0] sm:$0xff] }
  0x3b   : >> { %1916 = vmatprep.subr.mxu1 %v1720_v3  ;;  %1858 = vmatpush3.msra.mxu0 %v1672_v4  ;;  %v1712_v46 = vld [vmem:[%s2169_s30 + $0x3b8] sm:$0xff]  ;;  %v1663_v49 = vld [vmem:[%s2169_s30 + $0x230] sm:$0xff]  ;;  %v2351_v51 = vld [vmem:[%s2243_s10 + $0x68] sm:$0xff] }
  0x3c   : >> { %380 = vmatprep.mubr.f32.mxu0 %v2263_v5  ;;  %510 = vmatprep.mubr.f32.mxu1 %v2263_v5  ;;  %v1696_v48 = vld [vmem:[%s2169_s30 + $0x338] sm:$0xff]  ;;  %v1711_v50 = vld [vmem:[%s2169_s30 + $0x3b0] sm:$0xff]  ;;  %v1678_v52 = vld [vmem:[%s2169_s30 + $0x2a8] sm:$0xff] }
  0x3d   : >> { %1859 = vmatprep.subr.mxu0 %v1687_v6  ;;  %1917 = vmatpush3.msra.mxu1 %v1704_v7  ;;  %v1695_v53 = vld [vmem:[%s2169_s30 + $0x330] sm:$0xff]  ;;  %v2356_v54 = vld [vmem:[%s2243_s10 + $0x60] sm:$0xff]  ;;  %v1662_v55 = vld [vmem:[%s2169_s30 + $0x228] sm:$0xff] }
  0x3e   : >> { %381 = vmatmul.mubr.f32.gmra.mxu0 %v2270_v8  ;;  %511 = vmatmul.mubr.f32.gmra.mxu1 %v2270_v8  ;;  %v1710_v56 = vld [vmem:[%s2169_s30 + $0x3a8] sm:$0xff]  ;;  %v1677_v57 = vld [vmem:[%s2169_s30 + $0x2a0] sm:$0xff]  ;;  %v2369_v61 = vld [vmem:[%s2243_s10 + $0x78] sm:$0xff] }
  0x3f   : >> { %1860 = vmatpush3.msra.mxu0 %v1671_v9  ;;  %1918 = vmatprep.subr.mxu1 %v1719_v11  ;;  %v1694_v58 = vld [vmem:[%s2169_s30 + $0x328] sm:$0xff]  ;;  %v1661_v59 = vld [vmem:[%s2169_s30 + $0x220] sm:$0xff]  ;;  %v1676_v62 = vld [vmem:[%s2169_s30 + $0x298] sm:$0xff] }
  0x40   : >> { %1861 = vmatprep.subr.mxu0 %v1686_v10  ;;  %1919 = vmatpush3.msra.mxu1 %v1703_v13  ;;  %v1709_v60 = vld [vmem:[%s2169_s30 + $0x3a0] sm:$0xff]  ;;  %v2374_v2 = vld [vmem:[%s2243_s10 + $0x70] sm:$0xff]  ;;  %v1660_v3 = vld [vmem:[%s2169_s30 + $0x218] sm:$0xff] }
  0x41   : >> { %1862 = vmatpush3.msra.mxu0 %v1670_v12  ;;  %385 = vmatprep.mubr.f32.mxu0 %v2282_v14  ;;  %v1693_v0 = vld [vmem:[%s2169_s30 + $0x320] sm:$0xff]  ;;  %v1708_v4 = vld [vmem:[%s2169_s30 + $0x398] sm:$0xff]  ;;  %v1675_v6 = vld [vmem:[%s2169_s30 + $0x290] sm:$0xff] }
  0x42   : >> { %515 = vmatprep.mubr.f32.mxu1 %v2282_v14  ;;  %1863 = vmatprep.subr.mxu0 %v1685_v15  ;;  %v1692_v7 = vld [vmem:[%s2169_s30 + $0x318] sm:$0xff]  ;;  %v2384_v9 = vld [vmem:[%s2243_s10 + $0x88] sm:$0xff]  ;;  %v1707_v10 = vld [vmem:[%s2169_s30 + $0x390] sm:$0xff] }
  0x43   : >> { %1920 = vmatprep.subr.mxu1 %v1718_v16  ;;  %386 = vmatmul.mubr.f32.gmra.mxu0 %v2287_v17  ;;  %v1659_v11 = vld [vmem:[%s2169_s30 + $0x210] sm:$0xff]  ;;  %v244_v13 = vld [vmem:[%s2243_s10 + $0x80] sm:$0xff]  ;;  %v1674_v15 = vld [vmem:[%s2169_s30 + $0x288] sm:$0xff] }
  0x44   : >> { %516 = vmatmul.mubr.f32.gmra.mxu1 %v2287_v17  ;;  %1864 = vmatpush3.msra.mxu0 %v1669_v18  ;;  %v1691_v12 = vld [vmem:[%s2169_s30 + $0x310] sm:$0xff]  ;;  %v1706_v16 = vld [vmem:[%s2169_s30 + $0x388] sm:$0xff] }
  0x45   : >> { %1921 = vmatpush3.msra.mxu1 %v1702_v19  ;;  %1865 = vmatprep.subr.mxu0 %v1684_v20  ;;  %v1658_v18 = vld [vmem:[%s2169_s30 + $0x208] sm:$0xff]  ;;  %v1673_v20 = vld [vmem:[%s2169_s30 + $0x280] sm:$0xff] }
  0x46   : >> { %1922 = vmatprep.subr.mxu1 %v1717_v21  ;;  %1866 = vmatpush3.msra.mxu0 %v1668_v22  ;;  %v1690_v19 = vld [vmem:[%s2169_s30 + $0x308] sm:$0xff]  ;;  %v1705_v21 = vld [vmem:[%s2169_s30 + $0x380] sm:$0xff] }
  0x47   : >> { %1923 = vmatpush3.msra.mxu1 %v1701_v23  ;;  %390 = vmatprep.mubr.f32.mxu0 %v2300_v24  ;;  %v1657_v22 = vld [vmem:[%s2169_s30 + $0x200] sm:$0xff] }
  0x48   : >> { %520 = vmatprep.mubr.f32.mxu1 %v2300_v24  ;;  %1924 = vmatprep.subr.mxu1 %v1716_v25  ;;  %v1689_v23 = vld [vmem:[%s2169_s30 + $0x300] sm:$0xff] }
  0x49   : >> { %391 = vmatmul.mubr.f32.gmra.mxu0 %v2304_v26  ;;  %521 = vmatmul.mubr.f32.gmra.mxu1 %v2304_v26 }
  0x4a   : >> { %1867 = vmatprep.subr.mxu0 %v1683_v27  ;;  %1925 = vmatpush3.msra.mxu1 %v1700_v28 }
  0x4b   : >> { %1868 = vmatpush3.msra.mxu0 %v1667_v29  ;;  %1926 = vmatprep.subr.mxu1 %v1715_v31 }
  0x4c   : >> { %1869 = vmatprep.subr.mxu0 %v1682_v30  ;;  %395 = vmatprep.mubr.f32.mxu0 %v2316_v32 }
  0x4d   : >> { %525 = vmatprep.mubr.f32.mxu1 %v2316_v32  ;;  %1870 = vmatpush3.msra.mxu0 %v1666_v33 }
  0x4e   : >> { %1927 = vmatpush3.msra.mxu1 %v1699_v34  ;;  %396 = vmatmul.mubr.f32.gmra.mxu0 %v2321_v35 }
  0x4f   : >> { %526 = vmatmul.mubr.f32.gmra.mxu1 %v2321_v35  ;;  %1871 = vmatprep.subr.mxu0 %v1681_v36 }
  0x50   : >> { %1928 = vmatprep.subr.mxu1 %v1714_v37  ;;  %1872 = vmatpush3.msra.mxu0 %v1665_v38 }
  0x51   : >> { %1929 = vmatpush3.msra.mxu1 %v1698_v39  ;;  %1873 = vmatprep.subr.mxu0 %v1680_v40 }
  0x52   : >> { %1930 = vmatprep.subr.mxu1 %v1713_v41  ;;  %400 = vmatprep.mubr.f32.mxu0 %v2334_v42 }
  0x53   : >> { %530 = vmatprep.mubr.f32.mxu1 %v2334_v42  ;;  %1874 = vmatpush3.msra.mxu0 %v1664_v43 }
  0x54   : >> { %1931 = vmatpush3.msra.mxu1 %v1697_v44  ;;  %401 = vmatmul.mubr.f32.gmra.mxu0 %v2339_v45 }
  0x55   : >> { %531 = vmatmul.mubr.f32.gmra.mxu1 %v2339_v45  ;;  %1932 = vmatprep.subr.mxu1 %v1712_v46 }
  0x56   : >> { %1875 = vmatprep.subr.mxu0 %v1679_v47  ;;  %1933 = vmatpush3.msra.mxu1 %v1696_v48 }
  0x57   : >> { %1876 = vmatpush3.msra.mxu0 %v1663_v49  ;;  %1934 = vmatprep.subr.mxu1 %v1711_v50 }
  0x58   : >> { %405 = vmatprep.mubr.f32.mxu0 %v2351_v51  ;;  %535 = vmatprep.mubr.f32.mxu1 %v2351_v51 }
  0x59   : >> { %1877 = vmatprep.subr.mxu0 %v1678_v52  ;;  %1935 = vmatpush3.msra.mxu1 %v1695_v53  ;;  %v430_v52 = vlaneseq }
  0x5a   : >> { %406 = vmatmul.mubr.f32.gmra.mxu0 %v2356_v54  ;;  %536 = vmatmul.mubr.f32.gmra.mxu1 %v2356_v54 }
  0x5b   : >> { %1878 = vmatpush3.msra.mxu0 %v1662_v55  ;;  %1936 = vmatprep.subr.mxu1 %v1710_v56  ;;  %v2475_v56 = vshrl.u32 %v430_v52, 7 }
  0x5c   : >> { %1879 = vmatprep.subr.mxu0 %v1677_v57  ;;  %1937 = vmatpush3.msra.mxu1 %v1694_v58 }
  0x5d   : >> { %1880 = vmatpush3.msra.mxu0 %v1661_v59  ;;  %1938 = vmatprep.subr.mxu1 %v1709_v60  ;;  %vm432_vm0 = vcmp.lt.s32.totalorder %v2475_v56, 7  ;;  %vm702_vm1 = vcmp.lt.s32.totalorder %v2475_v56, 6  ;;  %vm871_vm2 = vcmp.lt.s32.totalorder %v2475_v56, 5 }
  0x5e   : >> { %410 = vmatprep.mubr.f32.mxu0 %v2369_v61  ;;  %540 = vmatprep.mubr.f32.mxu1 %v2369_v61 }
  0x5f   : >> { %1881 = vmatprep.subr.mxu0 %v1676_v62  ;;  %1939 = vmatpush3.msra.mxu1 %v1693_v0 }
  0x60   : >> { %411 = vmatmul.mubr.f32.gmra.mxu0 %v2374_v2  ;;  %541 = vmatmul.mubr.f32.gmra.mxu1 %v2374_v2 }
  0x61   : >> { %1882 = vmatpush3.msra.mxu0 %v1660_v3  ;;  %1940 = vmatprep.subr.mxu1 %v1708_v4 }
  0x62   : >> { %1883 = vmatprep.subr.mxu0 %v1675_v6  ;;  %1941 = vmatpush3.msra.mxu1 %v1692_v7 }
  0x63   : >> { %415 = vmatprep.mubr.f32.mxu0 %v2384_v9  ;;  %1942 = vmatprep.subr.mxu1 %v1707_v10 }
  0x64   : >> { %545 = vmatprep.mubr.f32.mxu1 %v2384_v9  ;;  %1884 = vmatpush3.msra.mxu0 %v1659_v11 }
  0x65   : >> { %1943 = vmatpush3.msra.mxu1 %v1691_v12  ;;  %416 = vmatmul.mubr.f32.gmra.mxu0 %v244_v13 }
  0x66   : >> { %546 = vmatmul.mubr.f32.gmra.mxu1 %v244_v13  ;;  %1885 = vmatprep.subr.mxu0 %v1674_v15 }
  0x67   : >> { %1944 = vmatprep.subr.mxu1 %v1706_v16  ;;  %1886 = vmatpush3.msra.mxu0 %v1658_v18 }
  0x68   : >> { %1945 = vmatpush3.msra.mxu1 %v1690_v19  ;;  %1887 = vmatprep.subr.mxu0 %v1673_v20 }
  0x69   : >> { %1946 = vmatprep.subr.mxu1 %v1705_v21  ;;  %1888 = vmatpush3.msra.mxu0 %v1657_v22 }
  0x6a   : >> { %647 = vmatprep.mubr.f32.mxu0 %v2251_v63  ;;  %1947 = vmatpush3.msra.mxu1 %v1689_v23 }
  0x6b   : >> { %816 = vmatprep.mubr.f32.mxu1 %v2251_v63  ;;  %648 = vmatmul.mubr.f32.vlgmr.msra.gmra.mxu0 %v2255_v1 }
  0x6c   : >> { %817 = vmatmul.mubr.f32.vlgmr.msra.gmra.mxu1 %v2255_v1  ;;  %652 = vmatprep.mubr.f32.mxu0 %v2263_v5 }
  0x6d   : >> { %821 = vmatprep.mubr.f32.mxu1 %v2263_v5 }
  0x6f   : >> { %653 = vmatmul.mubr.f32.gmra.mxu0 %v2270_v8 }
  0x70   : >> { %822 = vmatmul.mubr.f32.gmra.mxu1 %v2270_v8  ;;  %657 = vmatprep.mubr.f32.mxu0 %v2282_v14 }
  0x71   : >> { %826 = vmatprep.mubr.f32.mxu1 %v2282_v14 }
  0x73   : >> { %658 = vmatmul.mubr.f32.gmra.mxu0 %v2287_v17 }
  0x74   : >> { %827 = vmatmul.mubr.f32.gmra.mxu1 %v2287_v17  ;;  %662 = vmatprep.mubr.f32.mxu0 %v2300_v24 }
  0x75   : >> { %831 = vmatprep.mubr.f32.mxu1 %v2300_v24 }
  0x77   : >> { %663 = vmatmul.mubr.f32.gmra.mxu0 %v2304_v26 }
  0x78   : >> { %832 = vmatmul.mubr.f32.gmra.mxu1 %v2304_v26  ;;  %667 = vmatprep.mubr.f32.mxu0 %v2316_v32 }
  0x79   : >> { %836 = vmatprep.mubr.f32.mxu1 %v2316_v32 }
  0x7b   : >> { %668 = vmatmul.mubr.f32.gmra.mxu0 %v2321_v35 }
  0x7c   : >> { %837 = vmatmul.mubr.f32.gmra.mxu1 %v2321_v35  ;;  %672 = vmatprep.mubr.f32.mxu0 %v2334_v42 }
  0x7d   : >> { %841 = vmatprep.mubr.f32.mxu1 %v2334_v42 }
  0x7f   : >> { %673 = vmatmul.mubr.f32.gmra.mxu0 %v2339_v45 }
  0x80   : >> { %842 = vmatmul.mubr.f32.gmra.mxu1 %v2339_v45  ;;  %677 = vmatprep.mubr.f32.mxu0 %v2351_v51 }
  0x81   : >> { %846 = vmatprep.mubr.f32.mxu1 %v2351_v51 }
  0x83   : >> { %678 = vmatmul.mubr.f32.gmra.mxu0 %v2356_v54 }
  0x84   : >> { %847 = vmatmul.mubr.f32.gmra.mxu1 %v2356_v54  ;;  %682 = vmatprep.mubr.f32.mxu0 %v2369_v61 }
  0x85   : >> { %851 = vmatprep.mubr.f32.mxu1 %v2369_v61 }
  0x87   : >> { %683 = vmatmul.mubr.f32.gmra.mxu0 %v2374_v2 }
  0x88   : >> { %852 = vmatmul.mubr.f32.gmra.mxu1 %v2374_v2  ;;  %687 = vmatprep.mubr.f32.mxu0 %v2384_v9 }
  0x89   : >> { %856 = vmatprep.mubr.f32.mxu1 %v2384_v9 }
  0x8b   : >> { %688 = vmatmul.mubr.f32.gmra.mxu0 %v244_v13 }
  0x8c   : >> { %857 = vmatmul.mubr.f32.gmra.mxu1 %v244_v13 }
  0xf9   : >> { %v1771_v63 = vpop.f32.mrf.mxu0 }
  0xfa   : >> { %v1830_v1 = vpop.f32.mrf.mxu1 }
  0xfb   : >> { %v1772_v5 = vpop.f32.mrf.mxu0 }
  0xfc   : >> { %v1831_v8 = vpop.f32.mrf.mxu1  ;;  %v1773_v59 = vadd.f32 %v1772_v5, %v1771_v63 }
  0xfd   : >> { %v1832_v18 = vadd.f32 %v1831_v8, %v1830_v1 }
  0xfe   : >> { %v1774_v14 = vpop.f32.mrf.mxu0  ;;  %v2435_v17 = vpop.f32.mrf.mxu1  ;;  %v421_v4 = vrot.slane %v1773_v59, 1 }
 0x100   : >> { %v1775_v24 = vpop.f32.mrf.mxu0  ;;  %v2437_v25 = vpop.f32.mrf.mxu1 }
 0x101   : >> { %v1776_v55 = vadd.f32 %v1775_v24, %v1774_v14 }
 0x103   : >> { %v1777_v26 = vpop.f32.mrf.mxu0  ;;  %v422_v0 = vrot.slane %v1776_v55, 1 }
 0x104   : >> { %v2439_v27 = vpop.f32.mrf.mxu1 }
 0x105   : >> { %v1778_v28 = vpop.f32.mrf.mxu0  ;;  %v440_v12 = vsel %vm432_vm0, %v421_v4, %v422_v0 }
 0x106   : >> { %v2441_v29 = vpop.f32.mrf.mxu1  ;;  %v1779_v60 = vadd.f32 %v1778_v28, %v1777_v26  ;;  %v508_v5 = vadd.f32 %v1832_v18, %v440_v12 }
 0x108   : >> { %v423_v7 = vrot.slane %v1779_v60, 1 }
 0x109   : >> { %v1780_v30 = vpop.f32.mrf.mxu0  ;;  %v2443_v31 = vpop.f32.mrf.mxu1 }
 0x10a   : >> { %v439_v14 = vsel %vm432_vm0, %v422_v0, %v423_v7 }
 0x10b   : >> { %v1781_v32 = vpop.f32.mrf.mxu0  ;;  %v2445_v33 = vpop.f32.mrf.mxu1 }
 0x10c   : >> { %v1782_v9 = vadd.f32 %v1781_v32, %v1780_v30  ;;  %v1841_v4 = vadd.f32 %v2445_v33, %v2443_v31 }
 0x10e   : >> { %v1783_v34 = vpop.f32.mrf.mxu0  ;;  %v424_v24 = vrot.slane %v1782_v9, 1 }
 0x10f   : >> { %v2447_v35 = vpop.f32.mrf.mxu1 }
 0x110   : >> { %v1784_v36 = vpop.f32.mrf.mxu0 }
 0x111   : >> { %v2449_v37 = vpop.f32.mrf.mxu1  ;;  %v2480_v19 = vadd.f32 %v1784_v36, %v1783_v34  ;;  %v1835_v34 = vadd.f32 %v2437_v25, %v2435_v17  ;;  %v1838_v17 = vadd.f32 %v2441_v29, %v2439_v27 }
 0x113   : >> { %v425_v36 = vrot.slane %v2480_v19, 1 }
 0x114   : >> { %v1786_v38 = vpop.f32.mrf.mxu0 }
 0x115   : >> { %v2451_v39 = vpop.f32.mrf.mxu1 }
 0x116   : >> { %v1787_v40 = vpop.f32.mrf.mxu0 }
 0x117   : >> { %v2453_v41 = vpop.f32.mrf.mxu1  ;;  %v2491_v55 = vadd.f32 %v1787_v40, %v1786_v38  ;;  %v438_v38 = vsel %vm432_vm0, %v423_v7, %v424_v24 }
 0x11a   : >> { %v2455_v42 = vpop.f32.mrf.mxu0  ;;  %v2457_v43 = vpop.f32.mrf.mxu1 }
 0x11c   : >> { %v2459_v44 = vpop.f32.mrf.mxu0  ;;  %v2461_v45 = vpop.f32.mrf.mxu1 }
 0x11d   : >> { %v1791_v31 = vadd.f32 %v2459_v44, %v2455_v42 }
 0x120   : >> { %v2463_v46 = vpop.f32.mrf.mxu0  ;;  %v2465_v47 = vpop.f32.mrf.mxu1 }
 0x122   : >> { %v2467_v48 = vpop.f32.mrf.mxu0  ;;  %v2469_v49 = vpop.f32.mrf.mxu1 }
 0x125   : >> { %v2471_v50 = vpop.f32.mrf.mxu0 }
 0x126   : >> { %v1854_v51 = vpop.f32.mrf.mxu1 }
 0x127   : >> { %v2473_v53 = vpop.f32.mrf.mxu0 }
 0x128   : >> { %v1855_v54 = vpop.f32.mrf.mxu1 }
 0x12b   : >> { %v1889_v57 = vpop.f32.mrf.mxu0 }
 0x12c   : >> { %v1948_v58 = vpop.f32.mrf.mxu1 }
 0x12d   : >> { %v1890_v61 = vpop.f32.mrf.mxu0 }
 0x12e   : >> { %v1949_v62 = vpop.f32.mrf.mxu1  ;;  %v1891_v6 = vadd.f32 %v1890_v61, %v1889_v57  ;;  %v513_v61 = vadd.f32 %v1835_v34, %v439_v14 }
 0x12f   : >> { %v1892_v2 = vpop.f32.mrf.mxu0  ;;  %v1950_v13 = vadd.f32 %v1949_v62, %v1948_v58  ;;  %v2498_v58 = vld [vmem:[%s2886_s2] ss:$0 sm:$0xff] }
 0x130   : >> { %v1951_v3 = vpop.f32.mrf.mxu1  ;;  %v693_v22 = vrot.slane %v1891_v6, 2  ;;  %v437_v6 = vsel %vm432_vm0, %v424_v24, %v425_v36 }
 0x131   : >> { %v1893_v10 = vpop.f32.mrf.mxu0  ;;  %v862_v30 = vrot.slane %v1950_v13, 3 }
 0x132   : >> { %v1952_v11 = vpop.f32.mrf.mxu1  ;;  %v1894_v15 = vadd.f32 %v1893_v10, %v1892_v2 }
 0x133   : >> { %v1953_v16 = vadd.f32 %v1952_v11, %v1951_v3  ;;  %v1895_v20 = vpop.f32.mrf.mxu0  ;;  %v426_v11 = vrot.slane %v2491_v55, 1 }
 0x134   : >> { %v1954_v21 = vpop.f32.mrf.mxu1  ;;  %v694_v23 = vrot.slane %v1894_v15, 2  ;;  %v518_v15 = vadd.f32 %v1838_v17, %v438_v38 }
 0x135   : >> { %v863_v63 = vrot.slane %v1953_v16, 3  ;;  %v1896_v26 = vpop.f32.mrf.mxu0  ;;  %v436_v42 = vsel %vm432_vm0, %v425_v36, %v426_v11 }
 0x136   : >> { %v1955_v28 = vpop.f32.mrf.mxu1  ;;  %v710_v1 = vsel %vm702_vm1, %v693_v22, %v694_v23  ;;  %v1897_v8 = vadd.f32 %v1896_v26, %v1895_v20 }
 0x137   : >> { %v1956_v32 = vadd.f32 %v1955_v28, %v1954_v21  ;;  %v711_v51 = vadd.f32 %v710_v1, %v508_v5  ;;  %v1898_v52 = vpop.f32.mrf.mxu0  ;;  %v879_v57 = vsel %vm871_vm2, %v862_v30, %v863_v63  ;;  %v427_v30 = vrot.slane %v1791_v31, 1 }
 0x138   : >> { %v1957_v54 = vpop.f32.mrf.mxu1  ;;  %v695_v59 = vrot.slane %v1897_v8, 2  ;;  %v2530_v1 = vadd.f32 %v2467_v48, %v2463_v46 }
 0x139   : >> { %v864_v60 = vrot.slane %v1956_v32, 3  ;;  %v880_v25 = vadd.f32 %v879_v57, %v711_v51  ;;  %v1899_v62 = vpop.f32.mrf.mxu0 }
 0x13a   : >> { %v1958_v0 = vpop.f32.mrf.mxu1  ;;  %v709_v40 = vsel %vm702_vm1, %v694_v23, %v695_v59  ;;  %v1900_v2 = vadd.f32 %v1899_v62, %v1898_v52  ;;  %v523_v23 = vadd.f32 %v1841_v4, %v437_v6  ;;  %v1844_v52 = vadd.f32 %v2449_v37, %v2447_v35 }
 0x13b   : >> { %v1959_v3 = vadd.f32 %v1958_v0, %v1957_v54  ;;  %v2511_v9 = vadd.f32 %v2498_v58, %v880_v25  ;;  %v712_v27 = vadd.f32 %v709_v40, %v513_v61  ;;  %v1901_v29 = vpop.f32.mrf.mxu0  ;;  %v878_v7 = vsel %vm871_vm2, %v863_v63, %v864_v60 }
 0x13c   : >> { %v1960_v10 = vpop.f32.mrf.mxu1  ;;  %v696_v12 = vrot.slane %v1900_v2, 2  ;;  %v435_v35 = vsel %vm432_vm0, %v426_v11, %v427_v30  ;;  %v428_v37 = vrot.slane %v2530_v1, 1  ;;  %v1797_v2 = vadd.f32 %v2473_v53, %v2471_v50 }
 0x13d   : >> { %v865_v13 = vrot.slane %v1959_v3, 3  ;;  %v1722_v33 = vmul.f32 -1.442695, %v2511_v9  ;;  %v881_v16 = vadd.f32 %v878_v7, %v712_v27  ;;  %v1902_v18 = vpop.f32.mrf.mxu0  ;;  %v1847_v27 = vadd.f32 %v2453_v41, %v2451_v39 }
 0x13e   : >> { %v1961_v19 = vpop.f32.mrf.mxu1  ;;  %v708_v20 = vsel %vm702_vm1, %v695_v59, %v696_v12  ;;  %v1903_v21 = vadd.f32 %v1902_v18, %v1901_v29 }
 0x13f   : >> { %v1962_v22 = vadd.f32 %v1961_v19, %v1960_v10  ;;  %2024 = vpow2.f32 %v1722_v33  ;;  %v2522_v63 = vadd.f32 %v2498_v58, %v881_v16  ;;  %v713_v5 = vadd.f32 %v708_v20, %v518_v15  ;;  %v1904_v14 = vpop.f32.mrf.mxu0 }
 0x140   : >> { %v1963_v24 = vpop.f32.mrf.mxu1  ;;  %v877_v44 = vsel %vm871_vm2, %v864_v60, %v865_v13  ;;  %v697_v26 = vrot.slane %v1903_v21, 2  ;;  %v528_v60 = vadd.f32 %v1844_v52, %v436_v42  ;;  %v533_v53 = vadd.f32 %v1847_v27, %v435_v35 }
 0x141   : >> { %v866_v28 = vrot.slane %v1962_v22, 3  ;;  %v1723_v8 = vmul.f32 -1.442695, %v2522_v63  ;;  %v882_v32 = vadd.f32 %v877_v44, %v713_v5  ;;  %v1905_v34 = vpop.f32.mrf.mxu0  ;;  %v434_v15 = vsel %vm432_vm0, %v427_v30, %v428_v37 }
 0x142   : >> { %v1964_v51 = vpop.f32.mrf.mxu1  ;;  %v707_v36 = vsel %vm702_vm1, %v696_v12, %v697_v26  ;;  %v1906_v54 = vadd.f32 %v1905_v34, %v1904_v14  ;;  %v429_v16 = vrot.slane %v1797_v2, 1  ;;  %v1850_v21 = vadd.f32 %v2461_v45, %v2457_v43 }
 0x143   : >> { %v1965_v55 = vadd.f32 %v1964_v51, %v1963_v24  ;;  %2026 = vpow2.f32 %v1723_v8  ;;  %v2538_v57 = vadd.f32 %v2498_v58, %v882_v32  ;;  %v714_v59 = vadd.f32 %v707_v36, %v523_v23  ;;  %v1907_v46 = vpop.f32.mrf.mxu0 }
 0x144   : >> { %v1966_v48 = vpop.f32.mrf.mxu1  ;;  %v876_v61 = vsel %vm871_vm2, %v865_v13, %v866_v28  ;;  %v698_v17 = vrot.slane %v1906_v54, 2  ;;  %v433_v45 = vsel %vm432_vm0, %v428_v37, %v429_v16  ;;  %v1853_v36 = vadd.f32 %v2469_v49, %v2465_v47 }
 0x145   : >> { %v867_v25 = vrot.slane %v1965_v55, 3  ;;  %v1724_v62 = vmul.f32 -1.442695, %v2538_v57  ;;  %v883_v0 = vadd.f32 %v876_v61, %v714_v59  ;;  %v1908_v38 = vpop.f32.mrf.mxu0 }
 0x146   : >> { %v1967_v40 = vpop.f32.mrf.mxu1  ;;  %v706_v3 = vsel %vm702_vm1, %v697_v26, %v698_v17  ;;  %v1909_v4 = vadd.f32 %v1908_v38, %v1907_v46  ;;  %v543_v61 = vadd.f32 %v1853_v36, %v433_v45 }
 0x147   : >> { %v1968_v6 = vadd.f32 %v1967_v40, %v1966_v48  ;;  %2028 = vpow2.f32 %v1724_v62  ;;  %v2553_v29 = vadd.f32 %v2498_v58, %v883_v0  ;;  %v715_v10 = vadd.f32 %v706_v3, %v528_v60  ;;  %v1910_v11 = vpop.f32.mrf.mxu0 }
 0x148   : >> { %v1969_v7 = vpop.f32.mrf.mxu1  ;;  %v875_v12 = vsel %vm871_vm2, %v866_v28, %v867_v25  ;;  %v699_v13 = vrot.slane %v1909_v4, 2  ;;  %v538_v28 = vadd.f32 %v1850_v21, %v434_v15 }
 0x149   : >> { %v868_v50 = vrot.slane %v1968_v6, 3  ;;  %v1725_v31 = vmul.f32 -1.442695, %v2553_v29  ;;  %v884_v33 = vadd.f32 %v875_v12, %v715_v10  ;;  %v1911_v39 = vpop.f32.mrf.mxu0 }
 0x14a   : >> { %v1970_v41 = vpop.f32.mrf.mxu1  ;;  %v705_v18 = vsel %vm702_vm1, %v698_v17, %v699_v13  ;;  %v1912_v19 = vadd.f32 %v1911_v39, %v1910_v11 }
 0x14b   : >> { %v1971_v20 = vadd.f32 %v1970_v41, %v1969_v7  ;;  %2030 = vpow2.f32 %v1725_v31  ;;  %v2565_v22 = vadd.f32 %v2498_v58, %v884_v33  ;;  %v716_v23 = vadd.f32 %v705_v18, %v533_v53  ;;  %v1913_v5 = vpop.f32.mrf.mxu0 }
 0x14c   : >> { %v1972_v14 = vpop.f32.mrf.mxu1  ;;  %v2025_v24 = vpop.eup %2024  ;;  %v874_v42 = vsel %vm871_vm2, %v867_v25, %v868_v50  ;;  %v700_v44 = vrot.slane %v1912_v19, 2 }
 0x14d   : >> { %v869_v26 = vrot.slane %v1971_v20, 3  ;;  %v927_v30 = vadd.f32 1.0, %v2025_v24  ;;  %v1726_v1 = vmul.f32 -1.442695, %v2565_v22  ;;  %v885_v8 = vadd.f32 %v874_v42, %v716_v23  ;;  %v1914_v32 = vpop.f32.mrf.mxu0 }
 0x14e   : >> { %v1973_v43 = vpop.f32.mrf.mxu1  ;;  %v704_v34 = vsel %vm702_vm1, %v699_v13, %v700_v44  ;;  %v1915_v51 = vadd.f32 %v1914_v32, %v1913_v5 }
 0x14f   : >> { %v1974_v52 = vadd.f32 %v1973_v43, %v1972_v14  ;;  %2032 = vrcp.f32 %v927_v30  ;;  %v900_v54 = vadd.f32 %v2498_v58, %v885_v8  ;;  %v717_v55 = vadd.f32 %v704_v34, %v538_v28 }
 0x150   : >> { %v2027_v59 = vpop.eup %2026  ;;  %2034 = vpow2.f32 %v1726_v1  ;;  %v873_v46 = vsel %vm871_vm2, %v868_v50, %v869_v26  ;;  %v701_v48 = vrot.slane %v1915_v51, 2 }
 0x151   : >> { %v870_v60 = vrot.slane %v1974_v52, 3  ;;  %v928_v17 = vadd.f32 1.0, %v2027_v59  ;;  %v1727_v25 = vmul.f32 -1.442695, %v900_v54  ;;  %v886_v35 = vadd.f32 %v873_v46, %v717_v55 }
 0x152   : >> { %v703_v37 = vsel %vm702_vm1, %v700_v44, %v701_v48 }
 0x153   : >> { %2036 = vrcp.f32 %v928_v17  ;;  %v901_v47 = vadd.f32 %v2498_v58, %v886_v35  ;;  %v718_v49 = vadd.f32 %v703_v37, %v543_v61  ;;  %v872_v0 = vsel %vm871_vm2, %v869_v26, %v870_v60 }
 0x154   : >> { %v2029_v62 = vpop.eup %2028  ;;  %2038 = vpow2.f32 %v1727_v25 }
 0x155   : >> { %v929_v38 = vadd.f32 1.0, %v2029_v62  ;;  %v1728_v40 = vmul.f32 -1.442695, %v901_v47  ;;  %v887_v2 = vadd.f32 %v872_v0, %v718_v49 }
 0x157   : >> { %2040 = vrcp.f32 %v929_v38  ;;  %v902_v3 = vadd.f32 %v2498_v58, %v887_v2 }
 0x158   : >> { %v2031_v4 = vpop.eup %2030  ;;  %2042 = vpow2.f32 %v1728_v40 }
 0x159   : >> { %v930_v6 = vadd.f32 1.0, %v2031_v4  ;;  %v1729_v27 = vmul.f32 -1.442695, %v902_v3 }
 0x15b   : >> { %2044 = vrcp.f32 %v930_v6 }
 0x15c   : >> { %v2033_v10 = vpop.eup %2032  ;;  %2046 = vpow2.f32 %v1729_v27 }
 0x15d   : >> { %v2035_v56 = vpop.eup %2034  ;;  %v951_v11 = vmul.f32 %v2033_v10, %v2511_v9 }
 0x15e   : >> { %v931_v7 = vadd.f32 1.0, %v2035_v56 }
 0x15f   : >> { %961 = vst [vmem:[%s2587_s19] sm:$0xff] %v951_v11 }
 0x160   : >> { %v2037_v12 = vpop.eup %2036  ;;  %2048 = vrcp.f32 %v931_v7 }
 0x161   : >> { %v2039_v58 = vpop.eup %2038  ;;  %v952_v13 = vmul.f32 %v2037_v12, %v2522_v63 }
 0x162   : >> { %v932_v50 = vadd.f32 1.0, %v2039_v58 }
 0x163   : >> { %962 = vst [vmem:[%s2587_s19 + $0x8] sm:$0xff] %v952_v13 }
 0x164   : >> { %v2041_v53 = vpop.eup %2040  ;;  %2050 = vrcp.f32 %v932_v50 }
 0x165   : >> { %v2043_v15 = vpop.eup %2042  ;;  %v953_v31 = vmul.f32 %v2041_v53, %v2538_v57 }
 0x166   : >> { %v933_v33 = vadd.f32 1.0, %v2043_v15 }
 0x167   : >> { %963 = vst [vmem:[%s2587_s19 + $0x10] sm:$0xff] %v953_v31 }
 0x168   : >> { %v2045_v9 = vpop.eup %2044  ;;  %2052 = vrcp.f32 %v933_v33 }
 0x169   : >> { %v2047_v39 = vpop.eup %2046  ;;  %v954_v41 = vmul.f32 %v2045_v9, %v2553_v29 }
 0x16a   : >> { %v934_v16 = vadd.f32 1.0, %v2047_v39 }
 0x16b   : >> { %964 = vst [vmem:[%s2587_s19 + $0x18] sm:$0xff] %v954_v41 }
 0x16c   : >> { %2054 = vrcp.f32 %v934_v16 }
 0x16d   : >> { %v2049_v63 = vpop.eup %2048 }
 0x16e   : >> { %v955_v18 = vmul.f32 %v2049_v63, %v2565_v22 }
 0x170   : >> { %965 = vst [vmem:[%s2587_s19 + $0x20] sm:$0xff] %v955_v18 }
 0x171   : >> { %v2051_v19 = vpop.eup %2050 }
 0x172   : >> { %v956_v20 = vmul.f32 %v2051_v19, %v900_v54 }
 0x174   : >> { %966 = vst [vmem:[%s2587_s19 + $0x28] sm:$0xff] %v956_v20 }
 0x175   : >> { %v2053_v57 = vpop.eup %2052 }
 0x176   : >> { %v957_v21 = vmul.f32 %v2053_v57, %v901_v47 }
 0x178   : >> { %967 = vst [vmem:[%s2587_s19 + $0x30] sm:$0xff] %v957_v21  ;;  %223 = sbr.rel (!%p221_p9) target bundleno = 22 (0x16), region = 115 }
 0x179   : >> { %v2055_v23 = vpop.eup %2054 }
 0x17a   : >> { %v958_v5 = vmul.f32 %v2055_v23, %v902_v3 }
 0x17c   : >> { %968 = vst [vmem:[%s2587_s19 + $0x38] sm:$0xff] %v958_v5 }
 0x17d   : > { %975 = sbr.rel (!%p2153_p3) target bundleno = 453 (0x1c5), region = 43  ;;  %s1738_s21 = sshll.u32 (%p2153_p3), %s2090_s14, 6 }
 0x17e   : > { %s2614_s25 = scalar_lea.vmem (%p2153_p3), %s2887_s3, %s1738_s21 }
 0x183   : > { %v1264_v29 = vld [vmem:[%s2176_s7] sm:$0xff]  ;;  %v1266_v22 = vld [vmem:[%s2176_s7 + $0x8] sm:$0xff]  ;;  %v1268_v14 = vld [vmem:[%s2176_s7 + $0x10] sm:$0xff] }
 0x184   : > { %v1270_v24 = vld [vmem:[%s2176_s7 + $0x18] sm:$0xff]  ;;  %v1272_v42 = vld [vmem:[%s2176_s7 + $0x20] sm:$0xff]  ;;  %v1274_v44 = vld [vmem:[%s2176_s7 + $0x28] sm:$0xff]  ;;  %1265 = vst [vmem:[%s2614_s25] sm:$0xff] %v1264_v29 }
 0x185   : > { %1267 = vst [vmem:[%s2614_s25 + $0x8] sm:$0xff] %v1266_v22  ;;  %1269 = vst [vmem:[%s2614_s25 + $0x10] sm:$0xff] %v1268_v14  ;;  %v1276_v26 = vld [vmem:[%s2176_s7 + $0x30] sm:$0xff]  ;;  %v1278_v28 = vld [vmem:[%s2176_s7 + $0x38] sm:$0xff] }
 0x186   : > { %1271 = vst [vmem:[%s2614_s25 + $0x18] sm:$0xff] %v1270_v24  ;;  %1273 = vst [vmem:[%s2614_s25 + $0x20] sm:$0xff] %v1272_v42  ;;  %v1280_v30 = vld [vmem:[%s2176_s7 + $0x40] sm:$0xff]  ;;  %v1282_v1 = vld [vmem:[%s2176_s7 + $0x48] sm:$0xff] }
 0x187   : > { %1275 = vst [vmem:[%s2614_s25 + $0x28] sm:$0xff] %v1274_v44  ;;  %1277 = vst [vmem:[%s2614_s25 + $0x30] sm:$0xff] %v1276_v26  ;;  %v1284_v8 = vld [vmem:[%s2176_s7 + $0x50] sm:$0xff]  ;;  %v1286_v32 = vld [vmem:[%s2176_s7 + $0x58] sm:$0xff] }
 0x188   : > { %1279 = vst [vmem:[%s2614_s25 + $0x38] sm:$0xff] %v1278_v28  ;;  %1281 = vst [vmem:[%s2614_s25 + $0x80] sm:$0xff] %v1280_v30  ;;  %v1288_v43 = vld [vmem:[%s2176_s7 + $0x60] sm:$0xff]  ;;  %v1290_v45 = vld [vmem:[%s2176_s7 + $0x68] sm:$0xff] }
 0x189   : > { %1283 = vst [vmem:[%s2614_s25 + $0x88] sm:$0xff] %v1282_v1  ;;  %1285 = vst [vmem:[%s2614_s25 + $0x90] sm:$0xff] %v1284_v8  ;;  %v1292_v34 = vld [vmem:[%s2176_s7 + $0x70] sm:$0xff]  ;;  %v1294_v51 = vld [vmem:[%s2176_s7 + $0x78] sm:$0xff] }
 0x18a   : > { %1287 = vst [vmem:[%s2614_s25 + $0x98] sm:$0xff] %v1286_v32  ;;  %1289 = vst [vmem:[%s2614_s25 + $0xa0] sm:$0xff] %v1288_v43  ;;  %v1296_v52 = vld [vmem:[%s2176_s7 + $0x80] sm:$0xff]  ;;  %v1298_v36 = vld [vmem:[%s2176_s7 + $0x88] sm:$0xff] }
 0x18b   : > { %1291 = vst [vmem:[%s2614_s25 + $0xa8] sm:$0xff] %v1290_v45  ;;  %1293 = vst [vmem:[%s2614_s25 + $0xb0] sm:$0xff] %v1292_v34  ;;  %v1300_v54 = vld [vmem:[%s2176_s7 + $0x90] sm:$0xff]  ;;  %v1302_v55 = vld [vmem:[%s2176_s7 + $0x98] sm:$0xff] }
 0x18c   : > { %1295 = vst [vmem:[%s2614_s25 + $0xb8] sm:$0xff] %v1294_v51  ;;  %1297 = vst [vmem:[%s2614_s25 + $0x100] sm:$0xff] %v1296_v52  ;;  %v1304_v59 = vld [vmem:[%s2176_s7 + $0xa0] sm:$0xff]  ;;  %v1306_v46 = vld [vmem:[%s2176_s7 + $0xa8] sm:$0xff] }
 0x18d   : > { %1299 = vst [vmem:[%s2614_s25 + $0x108] sm:$0xff] %v1298_v36  ;;  %1301 = vst [vmem:[%s2614_s25 + $0x110] sm:$0xff] %v1300_v54  ;;  %v1308_v48 = vld [vmem:[%s2176_s7 + $0xb0] sm:$0xff]  ;;  %v1310_v60 = vld [vmem:[%s2176_s7 + $0xb8] sm:$0xff] }
 0x18e   : > { %1303 = vst [vmem:[%s2614_s25 + $0x118] sm:$0xff] %v1302_v55  ;;  %1305 = vst [vmem:[%s2614_s25 + $0x120] sm:$0xff] %v1304_v59  ;;  %v1312_v61 = vld [vmem:[%s2176_s7 + $0xc0] sm:$0xff]  ;;  %v1314_v17 = vld [vmem:[%s2176_s7 + $0xc8] sm:$0xff] }
 0x18f   : > { %1307 = vst [vmem:[%s2614_s25 + $0x128] sm:$0xff] %v1306_v46  ;;  %1309 = vst [vmem:[%s2614_s25 + $0x130] sm:$0xff] %v1308_v48  ;;  %v1316_v25 = vld [vmem:[%s2176_s7 + $0xd0] sm:$0xff]  ;;  %v1318_v35 = vld [vmem:[%s2176_s7 + $0xd8] sm:$0xff] }
 0x190   : > { %1311 = vst [vmem:[%s2614_s25 + $0x138] sm:$0xff] %v1310_v60  ;;  %1313 = vst [vmem:[%s2614_s25 + $0x180] sm:$0xff] %v1312_v61  ;;  %v1320_v37 = vld [vmem:[%s2176_s7 + $0xe0] sm:$0xff]  ;;  %v1322_v47 = vld [vmem:[%s2176_s7 + $0xe8] sm:$0xff] }
 0x191   : > { %1315 = vst [vmem:[%s2614_s25 + $0x188] sm:$0xff] %v1314_v17  ;;  %1317 = vst [vmem:[%s2614_s25 + $0x190] sm:$0xff] %v1316_v25  ;;  %v1324_v49 = vld [vmem:[%s2176_s7 + $0xf0] sm:$0xff]  ;;  %v1326_v62 = vld [vmem:[%s2176_s7 + $0xf8] sm:$0xff] }
 0x192   : > { %1319 = vst [vmem:[%s2614_s25 + $0x198] sm:$0xff] %v1318_v35  ;;  %1321 = vst [vmem:[%s2614_s25 + $0x1a0] sm:$0xff] %v1320_v37  ;;  %v1328_v0 = vld [vmem:[%s2176_s7 + $0x100] sm:$0xff]  ;;  %v1330_v38 = vld [vmem:[%s2176_s7 + $0x108] sm:$0xff] }
 0x193   : > { %1323 = vst [vmem:[%s2614_s25 + $0x1a8] sm:$0xff] %v1322_v47  ;;  %1325 = vst [vmem:[%s2614_s25 + $0x1b0] sm:$0xff] %v1324_v49  ;;  %v1332_v40 = vld [vmem:[%s2176_s7 + $0x110] sm:$0xff]  ;;  %v1334_v2 = vld [vmem:[%s2176_s7 + $0x118] sm:$0xff] }
 0x194   : > { %1327 = vst [vmem:[%s2614_s25 + $0x1b8] sm:$0xff] %v1326_v62  ;;  %1329 = vst [vmem:[%s2614_s25 + $0x200] sm:$0xff] %v1328_v0  ;;  %v1336_v3 = vld [vmem:[%s2176_s7 + $0x120] sm:$0xff]  ;;  %v1338_v4 = vld [vmem:[%s2176_s7 + $0x128] sm:$0xff] }
 0x195   : > { %1331 = vst [vmem:[%s2614_s25 + $0x208] sm:$0xff] %v1330_v38  ;;  %1333 = vst [vmem:[%s2614_s25 + $0x210] sm:$0xff] %v1332_v40  ;;  %v1340_v6 = vld [vmem:[%s2176_s7 + $0x130] sm:$0xff]  ;;  %v1342_v27 = vld [vmem:[%s2176_s7 + $0x138] sm:$0xff] }
 0x196   : > { %1335 = vst [vmem:[%s2614_s25 + $0x218] sm:$0xff] %v1334_v2  ;;  %1337 = vst [vmem:[%s2614_s25 + $0x220] sm:$0xff] %v1336_v3  ;;  %v1344_v10 = vld [vmem:[%s2176_s7 + $0x140] sm:$0xff]  ;;  %v1346_v56 = vld [vmem:[%s2176_s7 + $0x148] sm:$0xff] }
 0x197   : > { %1339 = vst [vmem:[%s2614_s25 + $0x228] sm:$0xff] %v1338_v4  ;;  %1341 = vst [vmem:[%s2614_s25 + $0x230] sm:$0xff] %v1340_v6  ;;  %v1348_v11 = vld [vmem:[%s2176_s7 + $0x150] sm:$0xff]  ;;  %v1350_v7 = vld [vmem:[%s2176_s7 + $0x158] sm:$0xff] }
 0x198   : > { %1343 = vst [vmem:[%s2614_s25 + $0x238] sm:$0xff] %v1342_v27  ;;  %1345 = vst [vmem:[%s2614_s25 + $0x280] sm:$0xff] %v1344_v10  ;;  %v1352_v12 = vld [vmem:[%s2176_s7 + $0x160] sm:$0xff]  ;;  %v1354_v58 = vld [vmem:[%s2176_s7 + $0x168] sm:$0xff] }
 0x199   : > { %1347 = vst [vmem:[%s2614_s25 + $0x288] sm:$0xff] %v1346_v56  ;;  %1349 = vst [vmem:[%s2614_s25 + $0x290] sm:$0xff] %v1348_v11  ;;  %v1356_v13 = vld [vmem:[%s2176_s7 + $0x170] sm:$0xff]  ;;  %v1358_v50 = vld [vmem:[%s2176_s7 + $0x178] sm:$0xff] }
 0x19a   : > { %1351 = vst [vmem:[%s2614_s25 + $0x298] sm:$0xff] %v1350_v7  ;;  %1353 = vst [vmem:[%s2614_s25 + $0x2a0] sm:$0xff] %v1352_v12  ;;  %v1360_v53 = vld [vmem:[%s2176_s7 + $0x180] sm:$0xff]  ;;  %v1362_v15 = vld [vmem:[%s2176_s7 + $0x188] sm:$0xff] }
 0x19b   : > { %1355 = vst [vmem:[%s2614_s25 + $0x2a8] sm:$0xff] %v1354_v58  ;;  %1357 = vst [vmem:[%s2614_s25 + $0x2b0] sm:$0xff] %v1356_v13  ;;  %v1364_v31 = vld [vmem:[%s2176_s7 + $0x190] sm:$0xff]  ;;  %v1366_v33 = vld [vmem:[%s2176_s7 + $0x198] sm:$0xff] }
 0x19c   : > { %1359 = vst [vmem:[%s2614_s25 + $0x2b8] sm:$0xff] %v1358_v50  ;;  %1361 = vst [vmem:[%s2614_s25 + $0x300] sm:$0xff] %v1360_v53  ;;  %v1368_v9 = vld [vmem:[%s2176_s7 + $0x1a0] sm:$0xff]  ;;  %v1370_v39 = vld [vmem:[%s2176_s7 + $0x1a8] sm:$0xff] }
 0x19d   : > { %1363 = vst [vmem:[%s2614_s25 + $0x308] sm:$0xff] %v1362_v15  ;;  %1365 = vst [vmem:[%s2614_s25 + $0x310] sm:$0xff] %v1364_v31  ;;  %v1372_v41 = vld [vmem:[%s2176_s7 + $0x1b0] sm:$0xff]  ;;  %v1374_v16 = vld [vmem:[%s2176_s7 + $0x1b8] sm:$0xff] }
 0x19e   : > { %1367 = vst [vmem:[%s2614_s25 + $0x318] sm:$0xff] %v1366_v33  ;;  %1369 = vst [vmem:[%s2614_s25 + $0x320] sm:$0xff] %v1368_v9  ;;  %v1376_v63 = vld [vmem:[%s2176_s7 + $0x1c0] sm:$0xff]  ;;  %v1378_v18 = vld [vmem:[%s2176_s7 + $0x1c8] sm:$0xff] }
 0x19f   : > { %1371 = vst [vmem:[%s2614_s25 + $0x328] sm:$0xff] %v1370_v39  ;;  %1373 = vst [vmem:[%s2614_s25 + $0x330] sm:$0xff] %v1372_v41  ;;  %v1380_v19 = vld [vmem:[%s2176_s7 + $0x1d0] sm:$0xff]  ;;  %v1382_v20 = vld [vmem:[%s2176_s7 + $0x1d8] sm:$0xff] }
 0x1a0   : > { %1375 = vst [vmem:[%s2614_s25 + $0x338] sm:$0xff] %v1374_v16  ;;  %1377 = vst [vmem:[%s2614_s25 + $0x380] sm:$0xff] %v1376_v63  ;;  %v1384_v57 = vld [vmem:[%s2176_s7 + $0x1e0] sm:$0xff]  ;;  %v1386_v21 = vld [vmem:[%s2176_s7 + $0x1e8] sm:$0xff] }
 0x1a1   : > { %1379 = vst [vmem:[%s2614_s25 + $0x388] sm:$0xff] %v1378_v18  ;;  %1381 = vst [vmem:[%s2614_s25 + $0x390] sm:$0xff] %v1380_v19  ;;  %v1388_v23 = vld [vmem:[%s2176_s7 + $0x1f0] sm:$0xff]  ;;  %v1390_v5 = vld [vmem:[%s2176_s7 + $0x1f8] sm:$0xff] }
 0x1a2   : > { %1383 = vst [vmem:[%s2614_s25 + $0x398] sm:$0xff] %v1382_v20  ;;  %1385 = vst [vmem:[%s2614_s25 + $0x3a0] sm:$0xff] %v1384_v57  ;;  %v1392_v29 = vld [vmem:[%s2176_s7 + $0x200] sm:$0xff]  ;;  %v1394_v22 = vld [vmem:[%s2176_s7 + $0x208] sm:$0xff] }
 0x1a3   : > { %1387 = vst [vmem:[%s2614_s25 + $0x3a8] sm:$0xff] %v1386_v21  ;;  %1389 = vst [vmem:[%s2614_s25 + $0x3b0] sm:$0xff] %v1388_v23  ;;  %v1396_v14 = vld [vmem:[%s2176_s7 + $0x210] sm:$0xff]  ;;  %v1398_v24 = vld [vmem:[%s2176_s7 + $0x218] sm:$0xff] }
 0x1a4   : > { %1391 = vst [vmem:[%s2614_s25 + $0x3b8] sm:$0xff] %v1390_v5  ;;  %1393 = vst [vmem:[%s2614_s25 + $0x400] sm:$0xff] %v1392_v29  ;;  %v1400_v42 = vld [vmem:[%s2176_s7 + $0x220] sm:$0xff]  ;;  %v1402_v44 = vld [vmem:[%s2176_s7 + $0x228] sm:$0xff] }
 0x1a5   : > { %1395 = vst [vmem:[%s2614_s25 + $0x408] sm:$0xff] %v1394_v22  ;;  %1397 = vst [vmem:[%s2614_s25 + $0x410] sm:$0xff] %v1396_v14  ;;  %v1404_v26 = vld [vmem:[%s2176_s7 + $0x230] sm:$0xff]  ;;  %v1406_v28 = vld [vmem:[%s2176_s7 + $0x238] sm:$0xff] }
 0x1a6   : > { %1399 = vst [vmem:[%s2614_s25 + $0x418] sm:$0xff] %v1398_v24  ;;  %1401 = vst [vmem:[%s2614_s25 + $0x420] sm:$0xff] %v1400_v42  ;;  %v1408_v30 = vld [vmem:[%s2176_s7 + $0x240] sm:$0xff]  ;;  %v1410_v1 = vld [vmem:[%s2176_s7 + $0x248] sm:$0xff] }
 0x1a7   : > { %1403 = vst [vmem:[%s2614_s25 + $0x428] sm:$0xff] %v1402_v44  ;;  %1405 = vst [vmem:[%s2614_s25 + $0x430] sm:$0xff] %v1404_v26  ;;  %v1412_v8 = vld [vmem:[%s2176_s7 + $0x250] sm:$0xff]  ;;  %v1414_v32 = vld [vmem:[%s2176_s7 + $0x258] sm:$0xff] }
 0x1a8   : > { %1407 = vst [vmem:[%s2614_s25 + $0x438] sm:$0xff] %v1406_v28  ;;  %1409 = vst [vmem:[%s2614_s25 + $0x480] sm:$0xff] %v1408_v30  ;;  %v1416_v43 = vld [vmem:[%s2176_s7 + $0x260] sm:$0xff]  ;;  %v1418_v45 = vld [vmem:[%s2176_s7 + $0x268] sm:$0xff] }
 0x1a9   : > { %1411 = vst [vmem:[%s2614_s25 + $0x488] sm:$0xff] %v1410_v1  ;;  %1413 = vst [vmem:[%s2614_s25 + $0x490] sm:$0xff] %v1412_v8  ;;  %v1420_v34 = vld [vmem:[%s2176_s7 + $0x270] sm:$0xff]  ;;  %v1422_v51 = vld [vmem:[%s2176_s7 + $0x278] sm:$0xff] }
 0x1aa   : > { %1415 = vst [vmem:[%s2614_s25 + $0x498] sm:$0xff] %v1414_v32  ;;  %1417 = vst [vmem:[%s2614_s25 + $0x4a0] sm:$0xff] %v1416_v43  ;;  %v1424_v52 = vld [vmem:[%s2176_s7 + $0x280] sm:$0xff]  ;;  %v1426_v36 = vld [vmem:[%s2176_s7 + $0x288] sm:$0xff] }
 0x1ab   : > { %1419 = vst [vmem:[%s2614_s25 + $0x4a8] sm:$0xff] %v1418_v45  ;;  %1421 = vst [vmem:[%s2614_s25 + $0x4b0] sm:$0xff] %v1420_v34  ;;  %v1428_v54 = vld [vmem:[%s2176_s7 + $0x290] sm:$0xff]  ;;  %v1430_v55 = vld [vmem:[%s2176_s7 + $0x298] sm:$0xff] }
 0x1ac   : > { %1423 = vst [vmem:[%s2614_s25 + $0x4b8] sm:$0xff] %v1422_v51  ;;  %1425 = vst [vmem:[%s2614_s25 + $0x500] sm:$0xff] %v1424_v52  ;;  %v1432_v59 = vld [vmem:[%s2176_s7 + $0x2a0] sm:$0xff]  ;;  %v1434_v46 = vld [vmem:[%s2176_s7 + $0x2a8] sm:$0xff] }
 0x1ad   : > { %1427 = vst [vmem:[%s2614_s25 + $0x508] sm:$0xff] %v1426_v36  ;;  %1429 = vst [vmem:[%s2614_s25 + $0x510] sm:$0xff] %v1428_v54  ;;  %v1436_v48 = vld [vmem:[%s2176_s7 + $0x2b0] sm:$0xff]  ;;  %v1438_v60 = vld [vmem:[%s2176_s7 + $0x2b8] sm:$0xff] }
 0x1ae   : > { %1431 = vst [vmem:[%s2614_s25 + $0x518] sm:$0xff] %v1430_v55  ;;  %1433 = vst [vmem:[%s2614_s25 + $0x520] sm:$0xff] %v1432_v59  ;;  %v1440_v61 = vld [vmem:[%s2176_s7 + $0x2c0] sm:$0xff]  ;;  %v1442_v17 = vld [vmem:[%s2176_s7 + $0x2c8] sm:$0xff] }
 0x1af   : > { %1435 = vst [vmem:[%s2614_s25 + $0x528] sm:$0xff] %v1434_v46  ;;  %1437 = vst [vmem:[%s2614_s25 + $0x530] sm:$0xff] %v1436_v48  ;;  %v1444_v25 = vld [vmem:[%s2176_s7 + $0x2d0] sm:$0xff]  ;;  %v1446_v35 = vld [vmem:[%s2176_s7 + $0x2d8] sm:$0xff] }
 0x1b0   : > { %1439 = vst [vmem:[%s2614_s25 + $0x538] sm:$0xff] %v1438_v60  ;;  %1441 = vst [vmem:[%s2614_s25 + $0x580] sm:$0xff] %v1440_v61  ;;  %v1448_v37 = vld [vmem:[%s2176_s7 + $0x2e0] sm:$0xff]  ;;  %v1450_v47 = vld [vmem:[%s2176_s7 + $0x2e8] sm:$0xff] }
 0x1b1   : > { %1443 = vst [vmem:[%s2614_s25 + $0x588] sm:$0xff] %v1442_v17  ;;  %1445 = vst [vmem:[%s2614_s25 + $0x590] sm:$0xff] %v1444_v25  ;;  %v1452_v49 = vld [vmem:[%s2176_s7 + $0x2f0] sm:$0xff]  ;;  %v1454_v62 = vld [vmem:[%s2176_s7 + $0x2f8] sm:$0xff] }
 0x1b2   : > { %1447 = vst [vmem:[%s2614_s25 + $0x598] sm:$0xff] %v1446_v35  ;;  %1449 = vst [vmem:[%s2614_s25 + $0x5a0] sm:$0xff] %v1448_v37  ;;  %v1456_v0 = vld [vmem:[%s2176_s7 + $0x300] sm:$0xff]  ;;  %v1458_v38 = vld [vmem:[%s2176_s7 + $0x308] sm:$0xff] }
 0x1b3   : > { %1451 = vst [vmem:[%s2614_s25 + $0x5a8] sm:$0xff] %v1450_v47  ;;  %1453 = vst [vmem:[%s2614_s25 + $0x5b0] sm:$0xff] %v1452_v49  ;;  %v1460_v40 = vld [vmem:[%s2176_s7 + $0x310] sm:$0xff]  ;;  %v1462_v2 = vld [vmem:[%s2176_s7 + $0x318] sm:$0xff] }
 0x1b4   : > { %1455 = vst [vmem:[%s2614_s25 + $0x5b8] sm:$0xff] %v1454_v62  ;;  %1457 = vst [vmem:[%s2614_s25 + $0x600] sm:$0xff] %v1456_v0  ;;  %v1464_v3 = vld [vmem:[%s2176_s7 + $0x320] sm:$0xff]  ;;  %v1466_v4 = vld [vmem:[%s2176_s7 + $0x328] sm:$0xff] }
 0x1b5   : > { %1459 = vst [vmem:[%s2614_s25 + $0x608] sm:$0xff] %v1458_v38  ;;  %1461 = vst [vmem:[%s2614_s25 + $0x610] sm:$0xff] %v1460_v40  ;;  %v1468_v6 = vld [vmem:[%s2176_s7 + $0x330] sm:$0xff]  ;;  %v1470_v27 = vld [vmem:[%s2176_s7 + $0x338] sm:$0xff] }
 0x1b6   : > { %1463 = vst [vmem:[%s2614_s25 + $0x618] sm:$0xff] %v1462_v2  ;;  %1465 = vst [vmem:[%s2614_s25 + $0x620] sm:$0xff] %v1464_v3  ;;  %v1472_v10 = vld [vmem:[%s2176_s7 + $0x340] sm:$0xff]  ;;  %v1474_v56 = vld [vmem:[%s2176_s7 + $0x348] sm:$0xff] }
 0x1b7   : > { %1467 = vst [vmem:[%s2614_s25 + $0x628] sm:$0xff] %v1466_v4  ;;  %1469 = vst [vmem:[%s2614_s25 + $0x630] sm:$0xff] %v1468_v6  ;;  %v1476_v11 = vld [vmem:[%s2176_s7 + $0x350] sm:$0xff]  ;;  %v1478_v7 = vld [vmem:[%s2176_s7 + $0x358] sm:$0xff] }
 0x1b8   : > { %1471 = vst [vmem:[%s2614_s25 + $0x638] sm:$0xff] %v1470_v27  ;;  %1473 = vst [vmem:[%s2614_s25 + $0x680] sm:$0xff] %v1472_v10  ;;  %v1480_v12 = vld [vmem:[%s2176_s7 + $0x360] sm:$0xff]  ;;  %v1482_v58 = vld [vmem:[%s2176_s7 + $0x368] sm:$0xff] }
 0x1b9   : > { %1475 = vst [vmem:[%s2614_s25 + $0x688] sm:$0xff] %v1474_v56  ;;  %1477 = vst [vmem:[%s2614_s25 + $0x690] sm:$0xff] %v1476_v11  ;;  %v1484_v13 = vld [vmem:[%s2176_s7 + $0x370] sm:$0xff]  ;;  %v1486_v50 = vld [vmem:[%s2176_s7 + $0x378] sm:$0xff] }
 0x1ba   : > { %1479 = vst [vmem:[%s2614_s25 + $0x698] sm:$0xff] %v1478_v7  ;;  %1481 = vst [vmem:[%s2614_s25 + $0x6a0] sm:$0xff] %v1480_v12  ;;  %v1488_v53 = vld [vmem:[%s2176_s7 + $0x380] sm:$0xff]  ;;  %v1490_v15 = vld [vmem:[%s2176_s7 + $0x388] sm:$0xff] }
 0x1bb   : > { %1483 = vst [vmem:[%s2614_s25 + $0x6a8] sm:$0xff] %v1482_v58  ;;  %1485 = vst [vmem:[%s2614_s25 + $0x6b0] sm:$0xff] %v1484_v13  ;;  %v1492_v31 = vld [vmem:[%s2176_s7 + $0x390] sm:$0xff]  ;;  %v1494_v33 = vld [vmem:[%s2176_s7 + $0x398] sm:$0xff] }
 0x1bc   : > { %1487 = vst [vmem:[%s2614_s25 + $0x6b8] sm:$0xff] %v1486_v50  ;;  %1489 = vst [vmem:[%s2614_s25 + $0x700] sm:$0xff] %v1488_v53  ;;  %v1496_v9 = vld [vmem:[%s2176_s7 + $0x3a0] sm:$0xff]  ;;  %v1498_v39 = vld [vmem:[%s2176_s7 + $0x3a8] sm:$0xff] }
 0x1bd   : > { %1491 = vst [vmem:[%s2614_s25 + $0x708] sm:$0xff] %v1490_v15  ;;  %1493 = vst [vmem:[%s2614_s25 + $0x710] sm:$0xff] %v1492_v31  ;;  %v1500_v41 = vld [vmem:[%s2176_s7 + $0x3b0] sm:$0xff]  ;;  %v1502_v16 = vld [vmem:[%s2176_s7 + $0x3b8] sm:$0xff] }
 0x1be   : > { %1495 = vst [vmem:[%s2614_s25 + $0x718] sm:$0xff] %v1494_v33  ;;  %1497 = vst [vmem:[%s2614_s25 + $0x720] sm:$0xff] %v1496_v9  ;;  %v1504_v63 = vld [vmem:[%s2176_s7 + $0x3c0] sm:$0xff]  ;;  %v1506_v18 = vld [vmem:[%s2176_s7 + $0x3c8] sm:$0xff] }
 0x1bf   : > { %1499 = vst [vmem:[%s2614_s25 + $0x728] sm:$0xff] %v1498_v39  ;;  %1501 = vst [vmem:[%s2614_s25 + $0x730] sm:$0xff] %v1500_v41  ;;  %v1508_v19 = vld [vmem:[%s2176_s7 + $0x3d0] sm:$0xff]  ;;  %v1510_v20 = vld [vmem:[%s2176_s7 + $0x3d8] sm:$0xff] }
 0x1c0   : > { %1503 = vst [vmem:[%s2614_s25 + $0x738] sm:$0xff] %v1502_v16  ;;  %1505 = vst [vmem:[%s2614_s25 + $0x780] sm:$0xff] %v1504_v63  ;;  %v1512_v57 = vld [vmem:[%s2176_s7 + $0x3e0] sm:$0xff]  ;;  %v1514_v21 = vld [vmem:[%s2176_s7 + $0x3e8] sm:$0xff] }
 0x1c1   : > { %1507 = vst [vmem:[%s2614_s25 + $0x788] sm:$0xff] %v1506_v18  ;;  %1509 = vst [vmem:[%s2614_s25 + $0x790] sm:$0xff] %v1508_v19  ;;  %v1516_v23 = vld [vmem:[%s2176_s7 + $0x3f0] sm:$0xff]  ;;  %v1518_v5 = vld [vmem:[%s2176_s7 + $0x3f8] sm:$0xff] }
 0x1c2   : > { %1511 = vst [vmem:[%s2614_s25 + $0x798] sm:$0xff] %v1510_v20  ;;  %1513 = vst [vmem:[%s2614_s25 + $0x7a0] sm:$0xff] %v1512_v57 }
 0x1c3   : > { %1515 = vst [vmem:[%s2614_s25 + $0x7a8] sm:$0xff] %v1514_v21  ;;  %1517 = vst [vmem:[%s2614_s25 + $0x7b0] sm:$0xff] %v1516_v23 }
 0x1c4   : > { %1519 = vst [vmem:[%s2614_s25 + $0x7b8] sm:$0xff] %v1518_v5 }
 0x1c5 PF: > { %s13_s16 = sadd.s32 1, %s2098_s16   ;;  %s2889_s12 = smov %s2086_s13 }
 0x1c6   : > { %p10_p10 = scmp.ge.s32.totalorder %s13_s16, 4   ;;  %s2890_s13 = smov %s2162_s22 }
 0x1c7   : > { %s2891_s14 = smov %s2094_s15  ;;  %s2892_s15 = smov %s2894_s18 }
 0x1c8   :  { %12 = sbr.rel (!%p10_p10) target bundleno = 3 (0x3), region = 126 }

</bundles_post_ra>
